<compile_context>
chip_gen: v7x
topology: tpu7x:2x2x1
jax: 0.10.0
libtpu: 0.0.40
codegen_flags: <defaults>
</compile_context>

<pallas_src>
import functools

import jax
import jax.numpy as jnp
import numpy as np
from jax import lax
from jax.experimental import pallas as pl
from jax.experimental.pallas import tpu as pltpu


def _round_up(x, m):
    return ((x + m - 1) // m) * m


@functools.lru_cache(maxsize=None)
def _tpu_vmem_capacity_bytes():
    """Physical per-core VMEM capacity, generation-aware with safe fallbacks."""
    try:
        info = pltpu.get_tpu_info()
        cap = int(getattr(info, "vmem_capacity_bytes", 0) or 0)
        if cap > 0:
            return cap
    except Exception:
        pass
    try:
        kind = jax.devices()[0].device_kind.lower()
        if "v7" in kind:
            return 64 * 1024 * 1024      # v7x: 64 MiB per TensorCore
    except Exception:
        pass
    return 128 * 1024 * 1024             # v5e / v6e


@functools.lru_cache(maxsize=None)
def _mxu_lane_width():
    """Native MXU tile width: 256 on v6e/v7x, 128 on v5e and older."""
    try:
        kind = jax.devices()[0].device_kind.lower()
    except Exception:
        return 128
    return 256 if ("v6" in kind or "v7" in kind) else 128


@functools.lru_cache(maxsize=None)
def _supports_pipeline_mode():
    """Probe-compile a trivial kernel using pipeline_mode=pl.Buffered(1)."""
    try:
        spec = pl.BlockSpec((8, 128), lambda i: (0, 0), pipeline_mode=pl.Buffered(1))

        def _k(x_ref, o_ref):
            o_ref[...] = x_ref[...]

        fn = pl.pallas_call(
            _k,
            out_shape=jax.ShapeDtypeStruct((8, 128), jnp.float32),
            grid=(1,),
            in_specs=[spec],
            out_specs=pl.BlockSpec((8, 128), lambda i: (0, 0)),
        )
        jax.jit(fn).lower(jax.ShapeDtypeStruct((8, 128), jnp.float32)).compile()
        return True
    except Exception:
        return False


def _bspec(shape, index_map, buffers=None):
    """BlockSpec with optional single/multi-buffering (graceful fallback)."""
    if buffers is not None and _supports_pipeline_mode():
        return pl.BlockSpec(shape, index_map, pipeline_mode=pl.Buffered(buffers))
    return pl.BlockSpec(shape, index_map)


def _pad_to_mxu(dim):
    """Pad a contraction / output-channel dim to an MXU-friendly multiple."""
    if dim >= 128 and _mxu_lane_width() >= 256:
        return _round_up(dim, 256)
    return _round_up(dim, 128)


def _clamp_vmem(requested):
    cap = _tpu_vmem_capacity_bytes()
    return int(min(max(int(requested), 8 << 20), cap))


# --------------------------------------------------------------------------
# Fused path: matmul into a VMEM-resident (Mp, Np) slab; BN stats + affine +
# ReLU on the last grid step; single HBM write of the final activation.
# --------------------------------------------------------------------------
def _fused_conv_bn_relu(A_pad, W_pad, g_pad, b_pad, *, M_actual, TM, eps):
    Mp, Kp = A_pad.shape
    _, Np = W_pad.shape
    n_tiles = Mp // TM
    inv_m = 1.0 / float(M_actual)
    n_pad_rows = float(Mp - M_actual)        # padded A rows are exactly zero

    def kernel(a_ref, w_ref, g_ref, b_ref, o_ref):
        i = pl.program_id(0)
        acc = jnp.dot(a_ref[...], w_ref[...], preferred_element_type=jnp.float32)
        row0 = pl.multiple_of(i * TM, TM)
        o_ref[pl.ds(row0, TM), :] = acc

        @pl.when(i == n_tiles - 1)
        def _finalize():
            x = o_ref[...]                                    # (Mp, Np) f32, resident
            # Padded rows are zero -> plain sum is already the valid-row sum.
            mean = jnp.sum(x, axis=0, keepdims=True) * inv_m
            cen = x - mean
            ssd = jnp.sum(cen * cen, axis=0, keepdims=True)
            if n_pad_rows:
                # each zero-padded row contributed (0 - mean)^2 = mean^2
                ssd = ssd - n_pad_rows * (mean * mean)
            var = ssd * inv_m
            scale = g_ref[...] * lax.rsqrt(var + eps)
            shift = b_ref[...] - mean * scale
            o_ref[...] = jnp.maximum(x * scale + shift, 0.0)

    a_buffers = 2 if n_tiles <= 2 else 3
    resident_factor = 1 if _supports_pipeline_mode() else 2
    vmem_bytes = (a_buffers * TM * Kp * 2
                  + resident_factor * (Kp * Np * 2 + Mp * Np * 4 + 2 * Np * 4))
    vmem_limit = _clamp_vmem(int(vmem_bytes * 1.25) + (2 << 20))

    cost = pl.CostEstimate(
        flops=2 * Mp * Kp * Np, transcendentals=0,
        bytes_accessed=Mp * Kp * 2 + Kp * Np * 2 + Mp * Np * 4 + 2 * Np * 4)

    grid_spec = pltpu.PrefetchScalarGridSpec(
        num_scalar_prefetch=0,
        grid=(n_tiles,),
        in_specs=[
            _bspec((TM, Kp), lambda i: (i, 0), buffers=a_buffers),   # A (streamed)
            _bspec((Kp, Np), lambda i: (0, 0), buffers=1),           # W (resident)
            _bspec((1, Np), lambda i: (0, 0), buffers=1),            # gamma
            _bspec((1, Np), lambda i: (0, 0), buffers=1),            # beta
        ],
        out_specs=_bspec((Mp, Np), lambda i: (0, 0), buffers=1),     # resident slab
    )
    return pl.pallas_call(
        kernel,
        out_shape=jax.ShapeDtypeStruct((Mp, Np), jnp.float32),
        grid_spec=grid_spec,
        compiler_params=pltpu.CompilerParams(
            dimension_semantics=("arbitrary",),   # all steps feed one resident slab
            vmem_limit_bytes=vmem_limit,
        ),
        cost_estimate=cost,
    )(A_pad, W_pad, g_pad, b_pad)


# --------------------------------------------------------------------------
# Two-phase path (scales to arbitrary M, megacore-friendly):
#   pass 1: tiled conv matmul + per-tile partial BN sums (pipelined writeback)
#   tiny XLA combine -> per-channel scale / shift
#   pass 2: tiled affine + ReLU apply, aliased in place over the conv buffer
# --------------------------------------------------------------------------
def _two_phase_conv_bn_relu(A_pad, W_pad, g_pad, b_pad, *, M_actual, TM, eps):
    Mp, Kp = A_pad.shape
    _, Np = W_pad.shape
    n_tiles = Mp // TM
    inv_m = 1.0 / float(M_actual)

    def conv_kernel(a_ref, w_ref, conv_ref, stats_ref):
        acc = jnp.dot(a_ref[...], w_ref[...], preferred_element_type=jnp.float32)
        conv_ref[...] = acc
        # Padded rows of A are zero, so these sums are already the valid sums.
        s = jnp.sum(acc, axis=0, keepdims=True)
        sq = jnp.sum(acc * acc, axis=0, keepdims=True)
        stats_ref[...] = jnp.concatenate(
            [s, sq, jnp.zeros((6, Np), jnp.float32)], axis=0)[None]

    a_buffers = 2 if n_tiles <= 2 else 3
    resident_factor = 1 if _supports_pipeline_mode() else 2
    vmem_bytes = (a_buffers * TM * Kp * 2 + resident_factor * Kp * Np * 2
                  + 2 * TM * Np * 4 + 2 * 8 * Np * 4)
    vmem_limit1 = _clamp_vmem(int(vmem_bytes * 1.25) + (2 << 20))
    cost1 = pl.CostEstimate(
        flops=2 * Mp * Kp * Np, transcendentals=0,
        bytes_accessed=Mp * Kp * 2 + Kp * Np * 2 + Mp * Np * 4 + n_tiles * 8 * Np * 4)

    conv, stats = pl.pallas_call(
        conv_kernel,
        out_shape=(jax.ShapeDtypeStruct((Mp, Np), jnp.float32),
                   jax.ShapeDtypeStruct((n_tiles, 8, Np), jnp.float32)),
        grid_spec=pltpu.PrefetchScalarGridSpec(
            num_scalar_prefetch=0,
            grid=(n_tiles,),
            in_specs=[
                _bspec((TM, Kp), lambda i: (i, 0), buffers=a_buffers),
                _bspec((Kp, Np), lambda i: (0, 0), buffers=1),
            ],
            out_specs=(
                pl.BlockSpec((TM, Np), lambda i: (i, 0)),
                pl.BlockSpec((1, 8, Np), lambda i: (i, 0, 0)),
            ),
        ),
        compiler_params=pltpu.CompilerParams(
            dimension_semantics=("parallel",),     # independent tiles -> both v7x cores
            vmem_limit_bytes=vmem_limit1,
        ),
        cost_estimate=cost1,
    )(A_pad, W_pad)

    # Tiny XLA combine: (n_tiles, Np) partial sums -> per-channel scale / shift.
    col_sum = jnp.sum(stats[:, 0, :], axis=0)                   # (Np,)
    col_sumsq = jnp.sum(stats[:, 1, :], axis=0)
    mean = col_sum * inv_m
    var = jnp.maximum(col_sumsq * inv_m - mean * mean, 0.0)
    scale = (g_pad[0] * lax.rsqrt(var + eps))[None, :]          # (1, Np)
    shift = (b_pad[0] - mean * scale[0])[None, :]

    def apply_kernel(conv_ref, s_ref, t_ref, o_ref):
        o_ref[...] = jnp.maximum(conv_ref[...] * s_ref[...] + t_ref[...], 0.0)

    vmem_limit2 = _clamp_vmem(int((4 * TM * Np * 4 + 4 * Np * 4) * 1.25) + (2 << 20))
    cost2 = pl.CostEstimate(flops=2 * Mp * Np, transcendentals=0,
                            bytes_accessed=2 * Mp * Np * 4 + 2 * Np * 4)
    return pl.pallas_call(
        apply_kernel,
        out_shape=jax.ShapeDtypeStruct((Mp, Np), jnp.float32),
        grid_spec=pltpu.PrefetchScalarGridSpec(
            num_scalar_prefetch=0,
            grid=(n_tiles,),
            in_specs=[
                pl.BlockSpec((TM, Np), lambda i: (i, 0)),
                _bspec((1, Np), lambda i: (0, 0), buffers=1),
                _bspec((1, Np), lambda i: (0, 0), buffers=1),
            ],
            out_specs=pl.BlockSpec((TM, Np), lambda i: (i, 0)),
        ),
        compiler_params=pltpu.CompilerParams(
            dimension_semantics=("parallel",),
            vmem_limit_bytes=vmem_limit2,
        ),
        cost_estimate=cost2,
        input_output_aliases={0: 0},   # overwrite the conv intermediate in place
    )(conv, scale, shift)


@functools.partial(jax.jit, static_argnames=("stride", "padding", "eps", "tm", "mode"))
def conv_norm_relu(x_nchw, weight, gamma, beta, bias=None, *, stride, padding,
                   eps=1e-5, tm=512, mode="auto"):
    """ConvNormRelu forward (PyTorch train-mode BatchNorm semantics).

    x_nchw: (N, Cin, H, W) f32 -> (N, Cout, OH, OW) f32.
    `bias` is accepted for nn.Conv2d API parity but unused: a per-channel conv
    bias is exactly cancelled by TRAIN-mode BatchNorm (eval-mode BN would not).
    mode: "auto" (fused if the conv slab fits the generation-aware VMEM budget,
          else two-phase), "fused", or "two_phase".
    """
    del bias
    N, Cin, H, W = x_nchw.shape
    Cout, _, KH, KW = weight.shape
    OH = (H + 2 * padding - KH) // stride + 1
    OW = (W + 2 * padding - KW) // stride + 1

    # --- im2col (XLA glue, NHWC internally) ---
    # TODO(synk): move im2col into the kernel (K-reduction over KH*KW shifted
    # windows of the padded NHWC input) to remove the KH*KW x HBM blowup.
    x = jnp.transpose(x_nchw, (0, 2, 3, 1)).astype(jnp.float32)
    xp = jnp.pad(x, ((0, 0), (padding, padding), (padding, padding), (0, 0)))
    cols = []
    for kh in range(KH):
        for kw in range(KW):
            cols.append(xp[:, kh:kh + stride * OH:stride, kw:kw + stride * OW:stride, :])
    patches = jnp.concatenate(cols, axis=-1)              # (N, OH, OW, KH*KW*Cin)

    M = N * OH * OW
    K = KH * KW * Cin
    TM = max(8, int(tm))
    Mp = _round_up(M, TM)
    Kp = _pad_to_mxu(K)
    Np = _pad_to_mxu(Cout)

    # bf16 feed to the MXU; f32 accumulation in-kernel.
    A = patches.reshape(M, K).astype(jnp.bfloat16)
    Wm = jnp.transpose(weight, (2, 3, 1, 0)).reshape(K, Cout).astype(jnp.bfloat16)
    A_pad = jnp.zeros((Mp, Kp), jnp.bfloat16).at[:M, :K].set(A)
    W_pad = jnp.zeros((Kp, Np), jnp.bfloat16).at[:K, :Cout].set(Wm)
    g_pad = jnp.zeros((1, Np), jnp.float32).at[0, :Cout].set(gamma.astype(jnp.float32))
    b_pad = jnp.zeros((1, Np), jnp.float32).at[0, :Cout].set(beta.astype(jnp.float32))

    if mode not in ("auto", "fused", "two_phase"):
        raise ValueError(f"unknown mode: {mode}")
    if mode == "auto":
        a_buffers = 2 if (Mp // TM) <= 2 else 3
        resident_factor = 1 if _supports_pipeline_mode() else 2
        fused_bytes = (a_buffers * TM * Kp * 2
                       + resident_factor * (Kp * Np * 2 + Mp * Np * 4 + 2 * Np * 4))
        use_fused = fused_bytes <= int(0.7 * _tpu_vmem_capacity_bytes())
    else:
        use_fused = (mode == "fused")

    if use_fused:
        y = _fused_conv_bn_relu(A_pad, W_pad, g_pad, b_pad,
                                M_actual=M, TM=TM, eps=float(eps))
    else:
        y = _two_phase_conv_bn_relu(A_pad, W_pad, g_pad, b_pad,
                                    M_actual=M, TM=TM, eps=float(eps))

    y = y[:M, :Cout].reshape(N, OH, OW, Cout)
    return jnp.transpose(y, (0, 3, 1, 2))


def _reference(x_nchw, weight, bias, gamma, beta, *, stride, padding, eps=1e-5,
               bf16_matmul=False):
    """Pure-JAX ConvNormRelu reference (PyTorch train-mode BN semantics)."""
    if bf16_matmul:
        xc, wc = x_nchw.astype(jnp.bfloat16), weight.astype(jnp.bfloat16)
        prec = None
    else:
        xc, wc = x_nchw.astype(jnp.float32), weight.astype(jnp.float32)
        prec = lax.Precision.HIGHEST
    out = lax.conv_general_dilated(
        xc, wc, window_strides=(stride, stride),
        padding=[(padding, padding), (padding, padding)],
        dimension_numbers=("NCHW", "OIHW", "NCHW"),
        preferred_element_type=jnp.float32,
        precision=prec,
    ) + bias[None, :, None, None].astype(jnp.float32)
    mean = jnp.mean(out, axis=(0, 2, 3), keepdims=True)
    var = jnp.mean((out - mean) ** 2, axis=(0, 2, 3), keepdims=True)
    out = (out - mean) * lax.rsqrt(var + eps)
    out = out * gamma[None, :, None, None] + beta[None, :, None, None]
    return jnp.maximum(out, 0.0)


if __name__ == "__main__":
    key = jax.random.PRNGKey(0)
    kx, kw_, kb, kg, kbt = jax.random.split(key, 5)

    # Module config: ConvNormRelu(in_channels=4, out_channels=8, kernel_size=3,
    #                             stride=1, padding=1)
    N, Cin, H, W = 2, 4, 16, 16
    Cout, KH, KW = 8, 3, 3
    x = jax.random.normal(kx, (N, Cin, H, W), jnp.float32)
    weight = jax.random.normal(kw_, (Cout, Cin, KH, KW), jnp.float32) * 0.1
    bias = jax.random.normal(kb, (Cout,), jnp.float32) * 0.1
    gamma = 1.0 + 0.1 * jax.random.normal(kg, (Cout,), jnp.float32)
    beta = 0.1 * jax.random.normal(kbt, (Cout,), jnp.float32)

    def check(xin, *, stride, padding, tm, mode="auto"):
        out = conv_norm_relu(xin, weight, gamma, beta, bias,
                             stride=stride, padding=padding, tm=tm, mode=mode)
        out = jax.block_until_ready(out)
        # Tight check vs. a reference using the same bf16 MXU feed.
        ref16 = _reference(xin, weight, bias, gamma, beta,
                           stride=stride, padding=padding, bf16_matmul=True)
        np.testing.assert_allclose(np.asarray(out), np.asarray(ref16),
                                   rtol=2e-3, atol=2e-3)
        # Looser check vs. the true f32 module semantics (bf16 feed tolerance).
        ref32 = _reference(xin, weight, bias, gamma, beta,
                           stride=stride, padding=padding, bf16_matmul=False)
        np.testing.assert_allclose(np.asarray(out), np.asarray(ref32),
                                   rtol=2.5e-2, atol=2.5e-2)
        return out

    # 1) Module config, auto (fused) path, whole conv in one grid step.
    out = check(x, stride=1, padding=1, tm=512, mode="auto")
    assert out.shape == (N, Cout, H, W) and out.dtype == jnp.float32

    # 2) Fused multi-tile path with the VMEM-resident output slab.
    check(x, stride=1, padding=1, tm=128, mode="fused")

    # 3) Scalable two-phase path (per-tile partial stats + pipelined apply).
    check(x, stride=1, padding=1, tm=128, mode="two_phase")

    # 4) Strided conv with padded rows (M not a multiple of TM), both paths.
    x2 = jax.random.normal(kx, (2, 4, 15, 15), jnp.float32)
    check(x2, stride=2, padding=0, tm=128, mode="fused")
    check(x2, stride=2, padding=0, tm=128, mode="two_phase")

    # 5) Multi-tile + padded-rows correction, both paths.
    check(x2, stride=1, padding=0, tm=128, mode="fused")
    check(x2, stride=1, padding=0, tm=128, mode="two_phase")

    print("KERNEL_OK")
</pallas_src>

<mosaic_0001>
module attributes {stable_mosaic.version = 11 : i64} {
  func.func @kernel(%arg0: i32, %arg1: memref<512x128xbf16, #tpu.memory_space<vmem>>, %arg2: memref<128x128xbf16, #tpu.memory_space<vmem>>, %arg3: memref<1x128xf32, #tpu.memory_space<vmem>>, %arg4: memref<1x128xf32, #tpu.memory_space<vmem>>, %arg5: memref<512x128xf32, #tpu.memory_space<vmem>>) attributes {dimension_semantics = [#tpu.dimension_semantics<arbitrary>], iteration_bounds = array<i64: 1>, scalar_prefetch = 0 : i64, scratch_operands = 0 : i64, tpu.core_type = #tpu.core_type<tc>, window_params = [{transform_indices = @transform_0, window_bounds = array<i64: 512, 128>}, {pipeline_mode = #tpu.pipeline_mode<synchronous>, transform_indices = @transform_1, window_bounds = array<i64: 128, 128>}, {pipeline_mode = #tpu.pipeline_mode<synchronous>, transform_indices = @transform_2, window_bounds = array<i64: 1, 128>}, {pipeline_mode = #tpu.pipeline_mode<synchronous>, transform_indices = @transform_3, window_bounds = array<i64: 1, 128>}, {pipeline_mode = #tpu.pipeline_mode<synchronous>, transform_indices = @transform_4, window_bounds = array<i64: 512, 128>}]} {
    %c0 = arith.constant 0 : index
    %c0_0 = arith.constant 0 : index
    %0 = vector.load %arg1[%c0, %c0_0] : memref<512x128xbf16, #tpu.memory_space<vmem>>, vector<512x128xbf16>
    %c0_1 = arith.constant 0 : index
    %c0_2 = arith.constant 0 : index
    %1 = vector.load %arg2[%c0_1, %c0_2] : memref<128x128xbf16, #tpu.memory_space<vmem>>, vector<128x128xbf16>
    %cst = arith.constant dense<0.000000e+00> : vector<512x128xf32>
    %2 = tpu.matmul %0, %1, %cst {dimension_numbers = #tpu.dot_dimension_numbers<[1], [0], [0], [1], [0, 0, 1, 1], [], []>} : vector<512x128xbf16>, vector<128x128xbf16>, vector<512x128xf32> -> vector<512x128xf32>
    %c512_i32 = arith.constant 512 : i32
    %3 = arith.muli %arg0, %c512_i32 : i32
    %4 = tpu.assume_multiple %3, 512 : i32
    %5 = arith.index_cast %4 : i32 to index
    %c0_3 = arith.constant 0 : index
    %6 = vector.load %arg5[%5, %c0_3] : memref<512x128xf32, #tpu.memory_space<vmem>>, vector<512x128xf32>
    tpu.vector_store %arg5[%5, %c0_3], %2 {strides = array<i32>} : memref<512x128xf32, #tpu.memory_space<vmem>>, vector<512x128xf32>,
    %c0_i32 = arith.constant 0 : i32
    %7 = arith.cmpi eq, %arg0, %c0_i32 : i32
    %8 = arith.extui %7 : i1 to i32
    %c0_i32_4 = arith.constant 0 : i32
    %9 = arith.cmpi ne, %8, %c0_i32_4 : i32
    scf.if %9 {
      %c0_5 = arith.constant 0 : index
      %c0_6 = arith.constant 0 : index
      %10 = vector.load %arg5[%c0_5, %c0_6] : memref<512x128xf32, #tpu.memory_space<vmem>>, vector<512x128xf32>
      %cst_7 = arith.constant dense<0.000000e+00> : vector<128xf32>
      %11 = vector.multi_reduction <add>, %10, %cst_7 [0] : vector<512x128xf32> to vector<128xf32>
      %12 = vector.shape_cast %11 : vector<128xf32> to vector<1x128xf32>
      %cst_8 = arith.constant 0.001953125 : f32
      %13 = vector.broadcast %cst_8 : f32 to vector<1x128xf32>
      %14 = arith.mulf %12, %13 : vector<1x128xf32>
      %15 = vector.broadcast %14 : vector<1x128xf32> to vector<512x128xf32>
      %16 = arith.subf %10, %15 : vector<512x128xf32>
      %17 = arith.mulf %16, %16 : vector<512x128xf32>
      %cst_9 = arith.constant dense<0.000000e+00> : vector<128xf32>
      %18 = vector.multi_reduction <add>, %17, %cst_9 [0] : vector<512x128xf32> to vector<128xf32>
      %19 = vector.shape_cast %18 : vector<128xf32> to vector<1x128xf32>
      %cst_10 = arith.constant 0.001953125 : f32
      %20 = vector.broadcast %cst_10 : f32 to vector<1x128xf32>
      %21 = arith.mulf %19, %20 : vector<1x128xf32>
      %c0_11 = arith.constant 0 : index
      %c0_12 = arith.constant 0 : index
      %22 = vector.load %arg3[%c0_11, %c0_12] : memref<1x128xf32, #tpu.memory_space<vmem>>, vector<1x128xf32>
      %cst_13 = arith.constant 9.99999974E-6 : f32
      %23 = vector.broadcast %cst_13 : f32 to vector<1x128xf32>
      %24 = arith.addf %21, %23 : vector<1x128xf32>
      %25 = math.rsqrt %24 : vector<1x128xf32>
      %26 = arith.mulf %22, %25 : vector<1x128xf32>
      %c0_14 = arith.constant 0 : index
      %c0_15 = arith.constant 0 : index
      %27 = vector.load %arg4[%c0_14, %c0_15] : memref<1x128xf32, #tpu.memory_space<vmem>>, vector<1x128xf32>
      %28 = arith.mulf %14, %26 : vector<1x128xf32>
      %29 = arith.subf %27, %28 : vector<1x128xf32>
      %30 = vector.broadcast %26 : vector<1x128xf32> to vector<512x128xf32>
      %31 = arith.mulf %10, %30 : vector<512x128xf32>
      %32 = vector.broadcast %29 : vector<1x128xf32> to vector<512x128xf32>
      %33 = arith.addf %31, %32 : vector<512x128xf32>
      %cst_16 = arith.constant 0.000000e+00 : f32
      %34 = vector.broadcast %cst_16 : f32 to vector<512x128xf32>
      %35 = arith.maximumf %33, %34 : vector<512x128xf32>
      %c0_17 = arith.constant 0 : index
      %c0_18 = arith.constant 0 : index
      %36 = vector.load %arg5[%c0_17, %c0_18] : memref<512x128xf32, #tpu.memory_space<vmem>>, vector<512x128xf32>
      tpu.vector_store %arg5[%c0_17, %c0_18], %35 {strides = array<i32>} : memref<512x128xf32, #tpu.memory_space<vmem>>, vector<512x128xf32>,
    } else {
    }
    return
  }
  func.func @transform_0(%arg0: i32) -> (i32, i32) {
    %c0_i32 = arith.constant 0 : i32
    %c0_i32_0 = arith.constant 0 : i32
    return %arg0, %c0_i32 : i32, i32
  }
  func.func @transform_1(%arg0: i32) -> (i32, i32) {
    %c0_i32 = arith.constant 0 : i32
    %c0_i32_0 = arith.constant 0 : i32
    %c0_i32_1 = arith.constant 0 : i32
    return %c0_i32, %c0_i32_0 : i32, i32
  }
  func.func @transform_2(%arg0: i32) -> (i32, i32) {
    %c0_i32 = arith.constant 0 : i32
    %c0_i32_0 = arith.constant 0 : i32
    %c0_i32_1 = arith.constant 0 : i32
    return %c0_i32, %c0_i32_0 : i32, i32
  }
  func.func @transform_3(%arg0: i32) -> (i32, i32) {
    %c0_i32 = arith.constant 0 : i32
    %c0_i32_0 = arith.constant 0 : i32
    %c0_i32_1 = arith.constant 0 : i32
    return %c0_i32, %c0_i32_0 : i32, i32
  }
  func.func @transform_4(%arg0: i32) -> (i32, i32) {
    %c0_i32 = arith.constant 0 : i32
    %c0_i32_0 = arith.constant 0 : i32
    %c0_i32_1 = arith.constant 0 : i32
    return %c0_i32, %c0_i32_0 : i32, i32
  }
}

</mosaic_0001>

<bundles_post_ra>
// kernel: conv_norm_relu.1
= control target key start
LH: loop header
LB: loop body
LE: loop exit
PB: predicated region body
PF: predicated region fallthrough
CT: control target
= control target key end

     0   :  { %s2788_s1 = inlined_call_operand.vmem [shape: bf16[128,128], index: 1, kind: input, shape index: {}]   ;;  %s2789_s0 = inlined_call_operand.vmem [shape: bf16[512,128], index: 0, kind: input, shape index: {}]   ;;  %s2790_s2 = inlined_call_operand.vmem [shape: f32[1,128], index: 2, kind: input, shape index: {}]   ;;  %s2791_s3 = inlined_call_operand.vmem [shape: f32[1,128], index: 3, kind: input, shape index: {}]   ;;  %s2792_s4 = inlined_call_operand.vmem [shape: f32[512,128], index: 4, kind: output, shape index: {}]  }
   0x1   :  { %v1484_v0 = vld [vmem:[%s2788_s1] sm:$0xff]   ;;  %v1485_v1 = vld [vmem:[%s2788_s1 + $0x8] sm:$0xff]   ;;  %v1486_v2 = vld [vmem:[%s2788_s1 + $0x10] sm:$0xff]  }
   0x2   :  { %1388 = vmatprep.subr.bf16.mxu0 %v1484_v0  ;;  %1468 = vmatprep.subr.bf16.mxu1 %v1484_v0  ;;  %v1487_v3 = vld [vmem:[%s2788_s1 + $0x18] sm:$0xff]   ;;  %v1492_v4 = vld [vmem:[%s2789_s0] sm:$0xff]   ;;  %v1489_v6 = vld [vmem:[%s2788_s1 + $0x28] sm:$0xff]  }
   0x3   :  { %1389 = vmatpush3.bf16.msra.mxu0 %v1484_v0  ;;  %1476 = vmatpush3.bf16.msra.mxu1 %v1484_v0  ;;  %v1488_v5 = vld [vmem:[%s2788_s1 + $0x20] sm:$0xff]   ;;  %v1490_v7 = vld [vmem:[%s2788_s1 + $0x30] sm:$0xff]   ;;  %v1491_v8 = vld [vmem:[%s2788_s1 + $0x38] sm:$0xff]  }
   0x4   :  { %1390 = vmatprep.subr.bf16.mxu0 %v1485_v1  ;;  %1469 = vmatprep.subr.bf16.mxu1 %v1485_v1  ;;  %v1508_v9 = vld [vmem:[%s2789_s0 + $0x80] sm:$0xff]   ;;  %v1493_v10 = vld [vmem:[%s2789_s0 + $0x8] sm:$0xff]   ;;  %v1494_v11 = vld [vmem:[%s2789_s0 + $0x10] sm:$0xff]  }
   0x5   :  { %1404 = vmatprep.mubr.bf16.mxu0 %v1492_v4  ;;  %1436 = vmatprep.mubr.bf16.mxu1 %v1508_v9  ;;  %v1509_v12 = vld [vmem:[%s2789_s0 + $0x88] sm:$0xff]   ;;  %v1510_v13 = vld [vmem:[%s2789_s0 + $0x90] sm:$0xff]   ;;  %v1495_v14 = vld [vmem:[%s2789_s0 + $0x18] sm:$0xff]  }
   0x6   :  { %v1496_v15 = vld [vmem:[%s2789_s0 + $0x20] sm:$0xff]   ;;  %v1511_v16 = vld [vmem:[%s2789_s0 + $0x98] sm:$0xff]   ;;  %v1497_v18 = vld [vmem:[%s2789_s0 + $0x28] sm:$0xff]  }
   0x7   :  { %1391 = vmatpush3.bf16.msra.mxu0 %v1485_v1  ;;  %1477 = vmatpush3.bf16.msra.mxu1 %v1485_v1  ;;  %v1512_v17 = vld [vmem:[%s2789_s0 + $0xa0] sm:$0xff]   ;;  %v1513_v19 = vld [vmem:[%s2789_s0 + $0xa8] sm:$0xff]   ;;  %v1498_v20 = vld [vmem:[%s2789_s0 + $0x30] sm:$0xff]  }
   0x8   :  { %1392 = vmatprep.subr.bf16.mxu0 %v1486_v2  ;;  %1470 = vmatprep.subr.bf16.mxu1 %v1486_v2  ;;  %v1514_v21 = vld [vmem:[%s2789_s0 + $0xb0] sm:$0xff]   ;;  %v1499_v22 = vld [vmem:[%s2789_s0 + $0x38] sm:$0xff]   ;;  %v1500_v24 = vld [vmem:[%s2789_s0 + $0x40] sm:$0xff]  }
   0x9   :  { %v1515_v23 = vld [vmem:[%s2789_s0 + $0xb8] sm:$0xff]   ;;  %v1516_v25 = vld [vmem:[%s2789_s0 + $0xc0] sm:$0xff]   ;;  %v1501_v26 = vld [vmem:[%s2789_s0 + $0x48] sm:$0xff]  }
   0xa   :  { %v1517_v27 = vld [vmem:[%s2789_s0 + $0xc8] sm:$0xff]   ;;  %v1502_v28 = vld [vmem:[%s2789_s0 + $0x50] sm:$0xff]   ;;  %v1503_v30 = vld [vmem:[%s2789_s0 + $0x58] sm:$0xff]  }
   0xb   :  { %1393 = vmatpush3.bf16.msra.mxu0 %v1486_v2  ;;  %1478 = vmatpush3.bf16.msra.mxu1 %v1486_v2  ;;  %v1518_v29 = vld [vmem:[%s2789_s0 + $0xd0] sm:$0xff]   ;;  %v1519_v31 = vld [vmem:[%s2789_s0 + $0xd8] sm:$0xff]   ;;  %v1504_v32 = vld [vmem:[%s2789_s0 + $0x60] sm:$0xff]  }
   0xc   :  { %1394 = vmatprep.subr.bf16.mxu0 %v1487_v3  ;;  %1471 = vmatprep.subr.bf16.mxu1 %v1487_v3  ;;  %v1520_v33 = vld [vmem:[%s2789_s0 + $0xe0] sm:$0xff]   ;;  %v1505_v34 = vld [vmem:[%s2789_s0 + $0x68] sm:$0xff]   ;;  %v1506_v36 = vld [vmem:[%s2789_s0 + $0x70] sm:$0xff]  }
   0xd   :  { %v1521_v35 = vld [vmem:[%s2789_s0 + $0xe8] sm:$0xff]   ;;  %v1522_v37 = vld [vmem:[%s2789_s0 + $0xf0] sm:$0xff]   ;;  %v1507_v38 = vld [vmem:[%s2789_s0 + $0x78] sm:$0xff]  }
   0xe   :  { %v1523_v39 = vld [vmem:[%s2789_s0 + $0xf8] sm:$0xff]  }
   0xf   :  { %1395 = vmatpush3.bf16.msra.mxu0 %v1487_v3  ;;  %1479 = vmatpush3.bf16.msra.mxu1 %v1487_v3 }
  0x10   :  { %1396 = vmatprep.subr.bf16.mxu0 %v1488_v5  ;;  %1472 = vmatprep.subr.bf16.mxu1 %v1488_v5 }
  0x13   :  { %1397 = vmatpush3.bf16.msra.mxu0 %v1488_v5  ;;  %1480 = vmatpush3.bf16.msra.mxu1 %v1488_v5 }
  0x14   :  { %1398 = vmatprep.subr.bf16.mxu0 %v1489_v6  ;;  %1473 = vmatprep.subr.bf16.mxu1 %v1489_v6 }
  0x17   :  { %1399 = vmatpush3.bf16.msra.mxu0 %v1489_v6  ;;  %1481 = vmatpush3.bf16.msra.mxu1 %v1489_v6 }
  0x18   :  { %1400 = vmatprep.subr.bf16.mxu0 %v1490_v7  ;;  %1474 = vmatprep.subr.bf16.mxu1 %v1490_v7 }
  0x1b   :  { %1401 = vmatpush3.bf16.msra.mxu0 %v1490_v7  ;;  %1482 = vmatpush3.bf16.msra.mxu1 %v1490_v7 }
  0x1c   :  { %1402 = vmatprep.subr.bf16.mxu0 %v1491_v8  ;;  %1475 = vmatprep.subr.bf16.mxu1 %v1491_v8 }
  0x1f   :  { %1403 = vmatpush3.bf16.msra.mxu0 %v1491_v8  ;;  %1483 = vmatpush3.bf16.msra.mxu1 %v1491_v8 }
  0x22   :  { %1405 = vmatmul.mubr.bf16.vlgmr.msra.gmra.mrb[0].mxu0 %v1493_v10  ;;  %1437 = vmatmul.mubr.bf16.vlgmr.msra.gmra.mrb[0].mxu1 %v1509_v12 }
  0x23   :  { %1408 = vmatprep.mubr.bf16.mxu0 %v1494_v11  ;;  %1440 = vmatprep.mubr.bf16.mxu1 %v1510_v13 }
  0x2a   :  { %1409 = vmatmul.mubr.bf16.gmra.mrb[4].mxu0 %v1495_v14  ;;  %1441 = vmatmul.mubr.bf16.gmra.mrb[4].mxu1 %v1511_v16 }
  0x2b   :  { %1412 = vmatprep.mubr.bf16.mxu0 %v1496_v15  ;;  %1444 = vmatprep.mubr.bf16.mxu1 %v1512_v17 }
  0x32   :  { %1413 = vmatmul.mubr.bf16.gmra.mrb[8].mxu0 %v1497_v18  ;;  %1445 = vmatmul.mubr.bf16.gmra.mrb[8].mxu1 %v1513_v19 }
  0x33   :  { %1416 = vmatprep.mubr.bf16.mxu0 %v1498_v20  ;;  %1448 = vmatprep.mubr.bf16.mxu1 %v1514_v21 }
  0x3a   :  { %1417 = vmatmul.mubr.bf16.gmra.mrb[12].mxu0 %v1499_v22  ;;  %1449 = vmatmul.mubr.bf16.gmra.mrb[12].mxu1 %v1515_v23 }
  0x3b   :  { %1420 = vmatprep.mubr.bf16.mxu0 %v1500_v24  ;;  %1452 = vmatprep.mubr.bf16.mxu1 %v1516_v25 }
  0x42   :  { %1421 = vmatmul.mubr.bf16.gmra.mrb[16].mxu0 %v1501_v26  ;;  %1453 = vmatmul.mubr.bf16.gmra.mrb[16].mxu1 %v1517_v27 }
  0x43   :  { %1424 = vmatprep.mubr.bf16.mxu0 %v1502_v28  ;;  %1456 = vmatprep.mubr.bf16.mxu1 %v1518_v29 }
  0x4a   :  { %1425 = vmatmul.mubr.bf16.gmra.mrb[20].mxu0 %v1503_v30  ;;  %1457 = vmatmul.mubr.bf16.gmra.mrb[20].mxu1 %v1519_v31 }
  0x4b   :  { %1428 = vmatprep.mubr.bf16.mxu0 %v1504_v32  ;;  %1460 = vmatprep.mubr.bf16.mxu1 %v1520_v33 }
  0x52   :  { %1429 = vmatmul.mubr.bf16.gmra.mrb[24].mxu0 %v1505_v34  ;;  %1461 = vmatmul.mubr.bf16.gmra.mrb[24].mxu1 %v1521_v35 }
  0x53   :  { %1432 = vmatprep.mubr.bf16.mxu0 %v1506_v36  ;;  %1464 = vmatprep.mubr.bf16.mxu1 %v1522_v37 }
  0x5a   :  { %1433 = vmatmul.mubr.bf16.gmra.mrb[28].mxu0 %v1507_v38  ;;  %1465 = vmatmul.mubr.bf16.gmra.mrb[28].mxu1 %v1523_v39 }
  0xf5   :  { %v1671_v40 = vpop.f32.mrb[0].mxu0  ;;  %v1673_v41 = vpop.f32.mrb[0].mxu1 }
  0xf6   :  { %2841 = vst [vmem:[#allocation2_spill] sm:$0xff] %v1671_v40  ;;  %v1675_v42 = vpop.f32.mrb[1].mxu0  ;;  %v1677_v43 = vpop.f32.mrb[1].mxu1 }
  0xf7   :  { %v1679_v44 = vpop.f32.mrb[2].mxu0  ;;  %v1681_v45 = vpop.f32.mrb[2].mxu1 }
  0xf8   :  { %2842 = vst [vmem:[#allocation3_spill] sm:$0xff] %v1679_v44  ;;  %v1683_v46 = vpop.f32.mrb[3].mxu0  ;;  %v1685_v47 = vpop.f32.mrb[3].mxu1 }
  0xf9   :  { %v761_v48 = vadd.f32 %v1683_v46, %v1675_v42 }
  0xfb   :  { %v762_v49 = vadd.f32 %v1671_v40, %v761_v48 }
  0xfd   :  { %v1690_v50 = vpop.f32.mrb[4].mxu0  ;;  %v763_v51 = vadd.f32 %v1679_v44, %v762_v49  ;;  %v1693_v52 = vpop.f32.mrb[4].mxu1 }
  0xfe   :  { %v1695_v53 = vpop.f32.mrb[5].mxu0  ;;  %v1697_v54 = vpop.f32.mrb[5].mxu1 }
  0xff   :  { %2843 = vst [vmem:[#allocation4_spill] sm:$0xff] %v1695_v53  ;;  %v764_v55 = vadd.f32 %v763_v51, %v1695_v53  ;;  %v1700_v56 = vpop.f32.mrb[6].mxu0  ;;  %v1702_v57 = vpop.f32.mrb[6].mxu1 }
 0x100   :  { %v1704_v58 = vpop.f32.mrb[7].mxu0  ;;  %v1706_v59 = vpop.f32.mrb[7].mxu1 }
 0x101   :  { %v765_v60 = vadd.f32 %v764_v55, %v1704_v58 }
 0x103   :  { %v766_v61 = vadd.f32 %v1690_v50, %v765_v60 }
 0x105   :  { %v1710_v62 = vpop.f32.mrb[8].mxu0  ;;  %v767_v63 = vadd.f32 %v1700_v56, %v766_v61  ;;  %v1713_v0 = vpop.f32.mrb[8].mxu1 }
 0x106   :  { %v1715_v1 = vpop.f32.mrb[9].mxu0  ;;  %v1717_v2 = vpop.f32.mrb[9].mxu1 }
 0x107   :  { %v768_v3 = vadd.f32 %v767_v63, %v1715_v1  ;;  %v1720_v4 = vpop.f32.mrb[10].mxu0  ;;  %v1722_v5 = vpop.f32.mrb[10].mxu1 }
 0x108   :  { %v1724_v6 = vpop.f32.mrb[11].mxu0  ;;  %v1726_v7 = vpop.f32.mrb[11].mxu1 }
 0x109   :  { %v769_v8 = vadd.f32 %v768_v3, %v1724_v6 }
 0x10b   :  { %v770_v9 = vadd.f32 %v1710_v62, %v769_v8 }
 0x10d   :  { %v1730_v10 = vpop.f32.mrb[12].mxu0  ;;  %v771_v11 = vadd.f32 %v1720_v4, %v770_v9  ;;  %v1733_v12 = vpop.f32.mrb[12].mxu1 }
 0x10e   :  { %2844 = vst [vmem:[#allocation5_spill] sm:$0xff] %v1730_v10  ;;  %v1735_v13 = vpop.f32.mrb[13].mxu0  ;;  %v1737_v14 = vpop.f32.mrb[13].mxu1 }
 0x10f   :  { %v772_v15 = vadd.f32 %v771_v11, %v1735_v13  ;;  %v1740_v16 = vpop.f32.mrb[14].mxu0  ;;  %v1742_v17 = vpop.f32.mrb[14].mxu1 }
 0x110   :  { %2845 = vst [vmem:[#allocation6_spill] sm:$0xff] %v1740_v16  ;;  %v1744_v18 = vpop.f32.mrb[15].mxu0  ;;  %v1746_v19 = vpop.f32.mrb[15].mxu1 }
 0x111   :  { %v773_v20 = vadd.f32 %v772_v15, %v1744_v18 }
 0x113   :  { %v774_v21 = vadd.f32 %v1730_v10, %v773_v20 }
 0x115   :  { %v1750_v22 = vpop.f32.mrb[16].mxu0  ;;  %v775_v23 = vadd.f32 %v1740_v16, %v774_v21  ;;  %v1753_v24 = vpop.f32.mrb[16].mxu1 }
 0x116   :  { %2846 = vst [vmem:[#allocation7_spill] sm:$0xff] %v1750_v22  ;;  %2847 = vst [vmem:[#allocation8_spill] sm:$0xff] %v1753_v24  ;;  %v1755_v25 = vpop.f32.mrb[17].mxu0  ;;  %v1757_v26 = vpop.f32.mrb[17].mxu1 }
 0x117   :  { %2848 = vst [vmem:[#allocation9_spill] sm:$0xff] %v1755_v25  ;;  %v776_v27 = vadd.f32 %v775_v23, %v1755_v25  ;;  %v1760_v28 = vpop.f32.mrb[18].mxu0  ;;  %v1762_v29 = vpop.f32.mrb[18].mxu1 }
 0x118   :  { %2849 = vst [vmem:[#allocation10_spill] sm:$0xff] %v1760_v28  ;;  %2850 = vst [vmem:[#allocation11_spill] sm:$0xff] %v1762_v29  ;;  %v1764_v30 = vpop.f32.mrb[19].mxu0  ;;  %v1766_v31 = vpop.f32.mrb[19].mxu1 }
 0x119   :  { %2851 = vst [vmem:[#allocation12_spill] sm:$0xff] %v1764_v30  ;;  %2852 = vst [vmem:[#allocation13_spill] sm:$0xff] %v1766_v31  ;;  %v777_v32 = vadd.f32 %v776_v27, %v1764_v30 }
 0x11b   :  { %v778_v33 = vadd.f32 %v1750_v22, %v777_v32 }
 0x11d   :  { %v1770_v34 = vpop.f32.mrb[20].mxu0  ;;  %v779_v35 = vadd.f32 %v1760_v28, %v778_v33  ;;  %v1773_v36 = vpop.f32.mrb[20].mxu1 }
 0x11e   :  { %2853 = vst [vmem:[#allocation14_spill] sm:$0xff] %v1770_v34  ;;  %2854 = vst [vmem:[#allocation15_spill] sm:$0xff] %v1773_v36  ;;  %v1775_v37 = vpop.f32.mrb[21].mxu0  ;;  %v1777_v38 = vpop.f32.mrb[21].mxu1 }
 0x11f   :  { %2855 = vst [vmem:[#allocation16_spill] sm:$0xff] %v1775_v37  ;;  %2856 = vst [vmem:[#allocation17_spill] sm:$0xff] %v1777_v38  ;;  %v780_v39 = vadd.f32 %v779_v35, %v1775_v37  ;;  %v1780_v48 = vpop.f32.mrb[22].mxu0  ;;  %v1782_v49 = vpop.f32.mrb[22].mxu1 }
 0x120   :  { %2857 = vst [vmem:[#allocation18_spill] sm:$0xff] %v1780_v48  ;;  %2858 = vst [vmem:[#allocation19_spill] sm:$0xff] %v1782_v49  ;;  %v1784_v51 = vpop.f32.mrb[23].mxu0  ;;  %v1786_v55 = vpop.f32.mrb[23].mxu1 }
 0x121   :  { %2859 = vst [vmem:[#allocation20_spill] sm:$0xff] %v1784_v51  ;;  %2860 = vst [vmem:[#allocation21_spill] sm:$0xff] %v1786_v55  ;;  %v781_v60 = vadd.f32 %v780_v39, %v1784_v51 }
 0x123   :  { %v782_v61 = vadd.f32 %v1770_v34, %v781_v60 }
 0x125   :  { %v1790_v63 = vpop.f32.mrb[24].mxu0  ;;  %v783_v3 = vadd.f32 %v1780_v48, %v782_v61  ;;  %v1793_v8 = vpop.f32.mrb[24].mxu1 }
 0x126   :  { %2861 = vst [vmem:[#allocation22_spill] sm:$0xff] %v1790_v63  ;;  %2862 = vst [vmem:[#allocation23_spill] sm:$0xff] %v1793_v8  ;;  %v1795_v9 = vpop.f32.mrb[25].mxu0  ;;  %v1797_v11 = vpop.f32.mrb[25].mxu1 }
 0x127   :  { %2863 = vst [vmem:[#allocation24_spill] sm:$0xff] %v1795_v9  ;;  %2864 = vst [vmem:[#allocation25_spill] sm:$0xff] %v1797_v11  ;;  %v784_v15 = vadd.f32 %v783_v3, %v1795_v9  ;;  %v1800_v20 = vpop.f32.mrb[26].mxu0  ;;  %v1802_v21 = vpop.f32.mrb[26].mxu1 }
 0x128   :  { %2865 = vst [vmem:[#allocation26_spill] sm:$0xff] %v1800_v20  ;;  %2866 = vst [vmem:[#allocation27_spill] sm:$0xff] %v1802_v21  ;;  %v1804_v23 = vpop.f32.mrb[27].mxu0  ;;  %v1806_v27 = vpop.f32.mrb[27].mxu1 }
 0x129   :  { %2867 = vst [vmem:[#allocation28_spill] sm:$0xff] %v1804_v23  ;;  %2868 = vst [vmem:[#allocation29_spill] sm:$0xff] %v1806_v27  ;;  %v785_v32 = vadd.f32 %v784_v15, %v1804_v23 }
 0x12b   :  { %v786_v33 = vadd.f32 %v1790_v63, %v785_v32 }
 0x12d   :  { %v1810_v35 = vpop.f32.mrb[28].mxu0  ;;  %v787_v39 = vadd.f32 %v1800_v20, %v786_v33  ;;  %v1813_v60 = vpop.f32.mrb[28].mxu1 }
 0x12e   :  { %2869 = vst [vmem:[#allocation30_spill] sm:$0xff] %v1813_v60  ;;  %v1815_v61 = vpop.f32.mrb[29].mxu0  ;;  %v1817_v3 = vpop.f32.mrb[29].mxu1 }
 0x12f   :  { %2870 = vst [vmem:[#allocation31_spill] sm:$0xff] %v1815_v61  ;;  %2871 = vst [vmem:[#allocation32_spill] sm:$0xff] %v1817_v3  ;;  %v788_v9 = vadd.f32 %v787_v39, %v1815_v61  ;;  %v1820_v48 = vpop.f32.mrb[30].mxu0  ;;  %v1822_v34 = vpop.f32.mrb[30].mxu1 }
 0x130   :  { %v1824_v51 = vpop.f32.mrb[31].mxu0  ;;  %v1826_v15 = vpop.f32.mrb[31].mxu1 }
 0x131   :  { %2872 = vst [vmem:[#allocation33_spill] sm:$0xff] %v1826_v15  ;;  %v789_v32 = vadd.f32 %v788_v9, %v1824_v51 }
 0x133   :  { %v790_v33 = vadd.f32 %v1810_v35, %v789_v32 }
 0x135   :  { %v791_v20 = vadd.f32 %v1820_v48, %v790_v33 }
 0x137   :  { %v792_v63 = vadd.f32 %v791_v20, %v1677_v43 }
 0x139   :  { %v793_v23 = vadd.f32 %v792_v63, %v1685_v47 }
 0x13b   :  { %v794_v39 = vadd.f32 %v1673_v41, %v793_v23 }
 0x13d   :  { %v795_v61 = vadd.f32 %v1681_v45, %v794_v39 }
 0x13f   :  { %v796_v37 = vadd.f32 %v795_v61, %v1697_v54 }
 0x141   :  { %v797_v28 = vadd.f32 %v796_v37, %v1706_v59 }
 0x143   :  { %v798_v22 = vadd.f32 %v1693_v52, %v797_v28 }
 0x145   :  { %v799_v9 = vadd.f32 %v1702_v57, %v798_v22 }
 0x147   :  { %v800_v32 = vadd.f32 %v799_v9, %v1717_v2 }
 0x149   :  { %v801_v33 = vadd.f32 %v800_v32, %v1726_v7 }
 0x14b   :  { %v802_v20 = vadd.f32 %v1713_v0, %v801_v33 }
 0x14d   :  { %v803_v63 = vadd.f32 %v1722_v5, %v802_v20 }
 0x14f   :  { %v804_v23 = vadd.f32 %v803_v63, %v1737_v14 }
 0x151   :  { %v805_v39 = vadd.f32 %v804_v23, %v1746_v19 }
 0x153   :  { %v806_v61 = vadd.f32 %v1733_v12, %v805_v39 }
 0x155   :  { %v807_v37 = vadd.f32 %v1742_v17, %v806_v61 }
 0x157   :  { %v808_v28 = vadd.f32 %v807_v37, %v1757_v26 }
 0x159   :  { %v809_v22 = vadd.f32 %v808_v28, %v1766_v31 }
 0x15b   :  { %v810_v9 = vadd.f32 %v1753_v24, %v809_v22 }
 0x15d   :  { %v811_v32 = vadd.f32 %v1762_v29, %v810_v9 }
 0x15f   :  { %v812_v33 = vadd.f32 %v811_v32, %v1777_v38 }
 0x161   :  { %v813_v20 = vadd.f32 %v812_v33, %v1786_v55 }
 0x163   :  { %v814_v63 = vadd.f32 %v1773_v36, %v813_v20 }
 0x165   :  { %v815_v23 = vadd.f32 %v1782_v49, %v814_v63 }
 0x167   :  { %v816_v39 = vadd.f32 %v815_v23, %v1797_v11 }
 0x169   :  { %v817_v61 = vadd.f32 %v816_v39, %v1806_v27 }
 0x16b   :  { %v818_v37 = vadd.f32 %v1793_v8, %v817_v61 }
 0x16d   :  { %v819_v28 = vadd.f32 %v1802_v21, %v818_v37 }
 0x16f   :  { %v820_v22 = vadd.f32 %v819_v28, %v1817_v3 }
 0x171   :  { %v821_v9 = vadd.f32 %v820_v22, %v1826_v15 }
 0x173   :  { %v822_v32 = vadd.f32 %v1813_v60, %v821_v9 }
 0x175   :  { %v823_v33 = vadd.f32 %v1822_v34, %v822_v32 }
 0x177   :  { %v824_v55 = vrot.slane %v823_v33, 4 }
 0x179   :  { %v825_v20 = vadd.f32 %v824_v55, %v823_v33 }
 0x17b   :  { %v826_v36 = vrot.slane %v825_v20, 2 }
 0x17d   :  { %v827_v63 = vadd.f32 %v826_v36, %v825_v20 }
 0x17f   :  { %v828_v49 = vrot.slane %v827_v63, 1 }
 0x181   :  { %v829_v23 = vadd.f32 %v828_v49, %v827_v63 }
 0x183   :  { %v1863_v11 = vmul.f32 0.001953125, %v829_v23 }
 0x185   :  { %v831_v39 = vsub.f32 %v1675_v42, %v1863_v11  ;;  %v832_v61 = vsub.f32 %v1683_v46, %v1863_v11  ;;  %v833_v37 = vsub.f32 %v1671_v40, %v1863_v11  ;;  %v834_v55 = vsub.f32 %v1679_v44, %v1863_v11 }
 0x186   :  { %v835_v36 = vsub.f32 %v1695_v53, %v1863_v11  ;;  %v836_v32 = vsub.f32 %v1704_v58, %v1863_v11  ;;  %v837_v63 = vsub.f32 %v1690_v50, %v1863_v11  ;;  %v839_v53 = vsub.f32 %v1715_v1, %v1863_v11 }
 0x187   :  { %v895_v28 = vmul.f32 %v831_v39, %v831_v39  ;;  %v896_v22 = vmul.f32 %v832_v61, %v832_v61  ;;  %v897_v49 = vmul.f32 %v833_v37, %v833_v37  ;;  %v898_v33 = vmul.f32 %v834_v55, %v834_v55 }
 0x188   :  { %v899_v23 = vmul.f32 %v835_v36, %v835_v36  ;;  %v838_v39 = vsub.f32 %v1700_v56, %v1863_v11  ;;  %v900_v61 = vmul.f32 %v836_v32, %v836_v32  ;;  %v901_v37 = vmul.f32 %v837_v63, %v837_v63 }
 0x189   :  { %v959_v9 = vadd.f32 %v896_v22, %v895_v28  ;;  %v840_v22 = vsub.f32 %v1724_v6, %v1863_v11  ;;  %v903_v36 = vmul.f32 %v839_v53, %v839_v53 }
 0x18a   :  { %v902_v55 = vmul.f32 %v838_v39, %v838_v39 }
 0x18b   :  { %v960_v20 = vadd.f32 %v959_v9, %v897_v49  ;;  %v841_v9 = vsub.f32 %v1710_v62, %v1863_v11  ;;  %v904_v32 = vmul.f32 %v840_v22, %v840_v22 }
 0x18d   :  { %v961_v40 = vadd.f32 %v960_v20, %v898_v33  ;;  %v842_v20 = vsub.f32 %v1720_v4, %v1863_v11  ;;  %v905_v63 = vmul.f32 %v841_v9, %v841_v9 }
 0x18f   :  { %v962_v44 = vadd.f32 %v961_v40, %v899_v23  ;;  %v843_v23 = vsub.f32 %v1735_v13, %v1863_v11  ;;  %v906_v39 = vmul.f32 %v842_v20, %v842_v20 }
 0x191   :  { %v963_v28 = vadd.f32 %v962_v44, %v900_v61  ;;  %v844_v61 = vsub.f32 %v1744_v18, %v1863_v11  ;;  %v907_v53 = vmul.f32 %v843_v23, %v843_v23 }
 0x193   :  { %v964_v49 = vadd.f32 %v963_v28, %v901_v37  ;;  %v845_v28 = vsub.f32 %v1730_v10, %v1863_v11  ;;  %v908_v22 = vmul.f32 %v844_v61, %v844_v61 }
 0x195   :  { %v965_v33 = vadd.f32 %v964_v49, %v902_v55  ;;  %v846_v49 = vsub.f32 %v1740_v16, %v1863_v11  ;;  %v909_v9 = vmul.f32 %v845_v28, %v845_v28 }
 0x197   :  { %v966_v40 = vadd.f32 %v965_v33, %v903_v36  ;;  %v847_v33 = vsub.f32 %v1755_v25, %v1863_v11  ;;  %v910_v20 = vmul.f32 %v846_v49, %v846_v49 }
 0x199   :  { %v967_v44 = vadd.f32 %v966_v40, %v904_v32  ;;  %v848_v40 = vsub.f32 %v1764_v30, %v1863_v11  ;;  %v911_v23 = vmul.f32 %v847_v33, %v847_v33 }
 0x19b   :  { %v968_v37 = vadd.f32 %v967_v44, %v905_v63  ;;  %v2873_v44 = vld [vmem:[#allocation7_spill] sm:$0xff]  ;;  %v912_v61 = vmul.f32 %v848_v40, %v848_v40 }
 0x19c   :  { %v849_v10 = vsub.f32 %v2873_v44, %v1863_v11 }
 0x19d   :  { %v969_v55 = vadd.f32 %v968_v37, %v906_v39  ;;  %v2874_v37 = vld [vmem:[#allocation10_spill] sm:$0xff] }
 0x19e   :  { %v850_v16 = vsub.f32 %v2874_v37, %v1863_v11  ;;  %v913_v28 = vmul.f32 %v849_v10, %v849_v10 }
 0x19f   :  { %v970_v36 = vadd.f32 %v969_v55, %v907_v53  ;;  %v2875_v55 = vld [vmem:[#allocation16_spill] sm:$0xff] }
 0x1a0   :  { %v851_v25 = vsub.f32 %v2875_v55, %v1863_v11  ;;  %v914_v49 = vmul.f32 %v850_v16, %v850_v16 }
 0x1a1   :  { %v971_v32 = vadd.f32 %v970_v36, %v908_v22  ;;  %v2876_v36 = vld [vmem:[#allocation20_spill] sm:$0xff] }
 0x1a2   :  { %v852_v30 = vsub.f32 %v2876_v36, %v1863_v11  ;;  %v915_v33 = vmul.f32 %v851_v25, %v851_v25 }
 0x1a3   :  { %v972_v63 = vadd.f32 %v971_v32, %v909_v9  ;;  %v2877_v32 = vld [vmem:[#allocation14_spill] sm:$0xff] }
 0x1a4   :  { %v853_v44 = vsub.f32 %v2877_v32, %v1863_v11  ;;  %v916_v40 = vmul.f32 %v852_v30, %v852_v30 }
 0x1a5   :  { %v973_v39 = vadd.f32 %v972_v63, %v910_v20  ;;  %v2878_v63 = vld [vmem:[#allocation18_spill] sm:$0xff] }
 0x1a6   :  { %v854_v37 = vsub.f32 %v2878_v63, %v1863_v11  ;;  %v917_v10 = vmul.f32 %v853_v44, %v853_v44 }
 0x1a7   :  { %v974_v53 = vadd.f32 %v973_v39, %v911_v23  ;;  %v2879_v39 = vld [vmem:[#allocation24_spill] sm:$0xff] }
 0x1a8   :  { %v855_v55 = vsub.f32 %v2879_v39, %v1863_v11  ;;  %v918_v16 = vmul.f32 %v854_v37, %v854_v37 }
 0x1a9   :  { %v975_v22 = vadd.f32 %v974_v53, %v912_v61  ;;  %v2880_v53 = vld [vmem:[#allocation28_spill] sm:$0xff] }
 0x1aa   :  { %v856_v36 = vsub.f32 %v2880_v53, %v1863_v11  ;;  %v919_v25 = vmul.f32 %v855_v55, %v855_v55 }
 0x1ab   :  { %v976_v9 = vadd.f32 %v975_v22, %v913_v28  ;;  %v2881_v22 = vld [vmem:[#allocation22_spill] sm:$0xff] }
 0x1ac   :  { %v857_v32 = vsub.f32 %v2881_v22, %v1863_v11  ;;  %v920_v30 = vmul.f32 %v856_v36, %v856_v36 }
 0x1ad   :  { %v977_v20 = vadd.f32 %v976_v9, %v914_v49  ;;  %v2882_v9 = vld [vmem:[#allocation26_spill] sm:$0xff] }
 0x1ae   :  { %v858_v63 = vsub.f32 %v2882_v9, %v1863_v11  ;;  %v921_v44 = vmul.f32 %v857_v32, %v857_v32 }
 0x1af   :  { %v978_v23 = vadd.f32 %v977_v20, %v915_v33  ;;  %v2883_v20 = vld [vmem:[#allocation31_spill] sm:$0xff] }
 0x1b0   :  { %v859_v39 = vsub.f32 %v2883_v20, %v1863_v11  ;;  %v922_v37 = vmul.f32 %v858_v63, %v858_v63 }
 0x1b1   :  { %v979_v61 = vadd.f32 %v978_v23, %v916_v40  ;;  %v860_v23 = vsub.f32 %v1824_v51, %v1863_v11 }
 0x1b2   :  { %v923_v55 = vmul.f32 %v859_v39, %v859_v39 }
 0x1b3   :  { %v980_v28 = vadd.f32 %v979_v61, %v917_v10  ;;  %v861_v61 = vsub.f32 %v1810_v35, %v1863_v11  ;;  %v924_v36 = vmul.f32 %v860_v23, %v860_v23 }
 0x1b5   :  { %v981_v49 = vadd.f32 %v980_v28, %v918_v16  ;;  %v862_v28 = vsub.f32 %v1820_v48, %v1863_v11  ;;  %v925_v32 = vmul.f32 %v861_v61, %v861_v61 }
 0x1b7   :  { %v982_v33 = vadd.f32 %v981_v49, %v919_v25  ;;  %v863_v49 = vsub.f32 %v1677_v43, %v1863_v11  ;;  %v926_v63 = vmul.f32 %v862_v28, %v862_v28 }
 0x1b9   :  { %v983_v40 = vadd.f32 %v982_v33, %v920_v30  ;;  %v864_v33 = vsub.f32 %v1685_v47, %v1863_v11  ;;  %v927_v39 = vmul.f32 %v863_v49, %v863_v49 }
 0x1bb   :  { %v984_v10 = vadd.f32 %v983_v40, %v921_v44  ;;  %v865_v40 = vsub.f32 %v1673_v41, %v1863_v11  ;;  %v928_v23 = vmul.f32 %v864_v33, %v864_v33 }
 0x1bd   :  { %v985_v16 = vadd.f32 %v984_v10, %v922_v37  ;;  %v866_v10 = vsub.f32 %v1681_v45, %v1863_v11  ;;  %v929_v61 = vmul.f32 %v865_v40, %v865_v40 }
 0x1bf   :  { %v986_v25 = vadd.f32 %v985_v16, %v923_v55  ;;  %v867_v16 = vsub.f32 %v1697_v54, %v1863_v11  ;;  %v930_v28 = vmul.f32 %v866_v10, %v866_v10 }
 0x1c1   :  { %v987_v30 = vadd.f32 %v986_v25, %v924_v36  ;;  %v868_v25 = vsub.f32 %v1706_v59, %v1863_v11  ;;  %v931_v49 = vmul.f32 %v867_v16, %v867_v16 }
 0x1c3   :  { %v988_v44 = vadd.f32 %v987_v30, %v925_v32  ;;  %v869_v30 = vsub.f32 %v1693_v52, %v1863_v11  ;;  %v932_v33 = vmul.f32 %v868_v25, %v868_v25 }
 0x1c5   :  { %v989_v37 = vadd.f32 %v988_v44, %v926_v63  ;;  %v870_v44 = vsub.f32 %v1702_v57, %v1863_v11  ;;  %v933_v40 = vmul.f32 %v869_v30, %v869_v30 }
 0x1c7   :  { %v990_v55 = vadd.f32 %v989_v37, %v927_v39  ;;  %v871_v37 = vsub.f32 %v1717_v2, %v1863_v11  ;;  %v934_v10 = vmul.f32 %v870_v44, %v870_v44 }
 0x1c9   :  { %v991_v36 = vadd.f32 %v990_v55, %v928_v23  ;;  %v872_v55 = vsub.f32 %v1726_v7, %v1863_v11  ;;  %v935_v16 = vmul.f32 %v871_v37, %v871_v37 }
 0x1cb   :  { %v992_v32 = vadd.f32 %v991_v36, %v929_v61  ;;  %v873_v36 = vsub.f32 %v1713_v0, %v1863_v11  ;;  %v936_v25 = vmul.f32 %v872_v55, %v872_v55 }
 0x1cd   :  { %v993_v63 = vadd.f32 %v992_v32, %v930_v28  ;;  %v874_v32 = vsub.f32 %v1722_v5, %v1863_v11  ;;  %v937_v30 = vmul.f32 %v873_v36, %v873_v36 }
 0x1cf   :  { %v994_v39 = vadd.f32 %v993_v63, %v931_v49  ;;  %v875_v63 = vsub.f32 %v1737_v14, %v1863_v11  ;;  %v938_v44 = vmul.f32 %v874_v32, %v874_v32 }
 0x1d1   :  { %v995_v23 = vadd.f32 %v994_v39, %v932_v33  ;;  %v876_v39 = vsub.f32 %v1746_v19, %v1863_v11  ;;  %v939_v37 = vmul.f32 %v875_v63, %v875_v63 }
 0x1d3   :  { %v996_v61 = vadd.f32 %v995_v23, %v933_v40  ;;  %v877_v23 = vsub.f32 %v1733_v12, %v1863_v11  ;;  %v940_v55 = vmul.f32 %v876_v39, %v876_v39 }
 0x1d5   :  { %v997_v28 = vadd.f32 %v996_v61, %v934_v10  ;;  %v878_v61 = vsub.f32 %v1742_v17, %v1863_v11  ;;  %v941_v36 = vmul.f32 %v877_v23, %v877_v23 }
 0x1d7   :  { %v998_v49 = vadd.f32 %v997_v28, %v935_v16  ;;  %v879_v28 = vsub.f32 %v1757_v26, %v1863_v11  ;;  %v942_v32 = vmul.f32 %v878_v61, %v878_v61 }
 0x1d9   :  { %v999_v33 = vadd.f32 %v998_v49, %v936_v25  ;;  %v880_v49 = vsub.f32 %v1766_v31, %v1863_v11  ;;  %v943_v63 = vmul.f32 %v879_v28, %v879_v28 }
 0x1db   :  { %v1000_v40 = vadd.f32 %v999_v33, %v937_v30  ;;  %v881_v33 = vsub.f32 %v1753_v24, %v1863_v11  ;;  %v944_v39 = vmul.f32 %v880_v49, %v880_v49 }
 0x1dd   :  { %v1001_v10 = vadd.f32 %v1000_v40, %v938_v44  ;;  %v882_v40 = vsub.f32 %v1762_v29, %v1863_v11  ;;  %v945_v23 = vmul.f32 %v881_v33, %v881_v33 }
 0x1df   :  { %v1002_v16 = vadd.f32 %v1001_v10, %v939_v37  ;;  %v883_v10 = vsub.f32 %v1777_v38, %v1863_v11  ;;  %v946_v61 = vmul.f32 %v882_v40, %v882_v40 }
 0x1e1   :  { %v1003_v25 = vadd.f32 %v1002_v16, %v940_v55  ;;  %v2884_v16 = vld [vmem:[#allocation21_spill] sm:$0xff]  ;;  %v947_v28 = vmul.f32 %v883_v10, %v883_v10 }
 0x1e2   :  { %v884_v31 = vsub.f32 %v2884_v16, %v1863_v11 }
 0x1e3   :  { %v1004_v30 = vadd.f32 %v1003_v25, %v941_v36  ;;  %v2885_v25 = vld [vmem:[#allocation15_spill] sm:$0xff] }
 0x1e4   :  { %v885_v24 = vsub.f32 %v2885_v25, %v1863_v11  ;;  %v948_v49 = vmul.f32 %v884_v31, %v884_v31 }
 0x1e5   :  { %v1005_v44 = vadd.f32 %v1004_v30, %v942_v32  ;;  %v2886_v30 = vld [vmem:[#allocation19_spill] sm:$0xff] }
 0x1e6   :  { %v886_v29 = vsub.f32 %v2886_v30, %v1863_v11  ;;  %v949_v33 = vmul.f32 %v885_v24, %v885_v24 }
 0x1e7   :  { %v1006_v37 = vadd.f32 %v1005_v44, %v943_v63  ;;  %v2887_v44 = vld [vmem:[#allocation25_spill] sm:$0xff] }
 0x1e8   :  { %v887_v38 = vsub.f32 %v2887_v44, %v1863_v11  ;;  %v950_v40 = vmul.f32 %v886_v29, %v886_v29 }
 0x1e9   :  { %v1007_v55 = vadd.f32 %v1006_v37, %v944_v39  ;;  %v888_v37 = vsub.f32 %v1806_v27, %v1863_v11 }
 0x1ea   :  { %v951_v10 = vmul.f32 %v887_v38, %v887_v38 }
 0x1eb   :  { %v1008_v36 = vadd.f32 %v1007_v55, %v945_v23  ;;  %v889_v55 = vsub.f32 %v1793_v8, %v1863_v11  ;;  %v952_v31 = vmul.f32 %v888_v37, %v888_v37 }
 0x1ed   :  { %v1009_v32 = vadd.f32 %v1008_v36, %v946_v61  ;;  %v890_v36 = vsub.f32 %v1802_v21, %v1863_v11  ;;  %v953_v24 = vmul.f32 %v889_v55, %v889_v55 }
 0x1ef   :  { %v1010_v63 = vadd.f32 %v1009_v32, %v947_v28  ;;  %v891_v32 = vsub.f32 %v1817_v3, %v1863_v11  ;;  %v954_v29 = vmul.f32 %v890_v36, %v890_v36 }
 0x1f1   :  { %v1011_v39 = vadd.f32 %v1010_v63, %v948_v49  ;;  %v892_v63 = vsub.f32 %v1826_v15, %v1863_v11  ;;  %v955_v38 = vmul.f32 %v891_v32, %v891_v32  ;;  %v1037_v32 = vlaneseq }
 0x1f3   :  { %v1012_v23 = vadd.f32 %v1011_v39, %v949_v33  ;;  %v893_v39 = vsub.f32 %v1813_v60, %v1863_v11  ;;  %v956_v37 = vmul.f32 %v892_v63, %v892_v63  ;;  %v1029_v63 = vld [vmem:[%s2790_s2] sm:$0x1] }
 0x1f5   :  { %v1013_v61 = vadd.f32 %v1012_v23, %v950_v40  ;;  %v894_v23 = vsub.f32 %v1822_v34, %v1863_v11 }
 0x1f7   :  { %v1014_v28 = vadd.f32 %v1013_v61, %v951_v10  ;;  %v957_v61 = vmul.f32 %v893_v39, %v893_v39  ;;  %v958_v3 = vmul.f32 %v894_v23, %v894_v23 }
 0x1f9   :  { %v1015_v49 = vadd.f32 %v1014_v28, %v952_v31 }
 0x1fb   :  { %v1016_v33 = vadd.f32 %v1015_v49, %v953_v24 }
 0x1fd   :  { %v1017_v40 = vadd.f32 %v1016_v33, %v954_v29  ;;  %v1993_v29 = vshrl.u32 %v1037_v32, 7  ;;  %v2894_v32 = vld [vmem:[#allocation12_spill] sm:$0xff] }
 0x1ff   :  { %v1018_v10 = vadd.f32 %v1017_v40, %v955_v38  ;;  %v2840_v33 = vsub.s32 0, %v1993_v29  ;;  %v2888_v40 = vld [vmem:[#allocation2_spill] sm:$0xff] }
 0x201   :  { %v1019_v21 = vadd.f32 %v1018_v10, %v956_v37  ;;  %v2890_v10 = vld [vmem:[#allocation4_spill] sm:$0xff] }
 0x203   :  { %v1020_v55 = vadd.f32 %v1019_v21, %v957_v61 }
 0x205   :  { %v1021_v31 = vadd.f32 %v1020_v55, %v958_v3 }
 0x207   :  { %v1022_v28 = vrot.slane %v1021_v31, 4 }
 0x209   :  { %v1023_v8 = vadd.f32 %v1022_v28, %v1021_v31 }
 0x20b   :  { %v1024_v15 = vrot.slane %v1023_v8, 2 }
 0x20d   :  { %v1025_v36 = vadd.f32 %v1024_v15, %v1023_v8  ;;  %v2002_v8 = vld [vmem:[%s2791_s3] sm:$0x1] }
 0x20f   :  { %v1026_v24 = vrot.slane %v1025_v36, 1 }
 0x211   :  { %v1027_v49 = vadd.f32 %v1026_v24, %v1025_v36  ;;  %v2891_v36 = vld [vmem:[#allocation5_spill] sm:$0xff]  ;;  %v2892_v24 = vld [vmem:[#allocation6_spill] sm:$0xff] }
 0x213   :  { %v1028_v27 = vmul.f32 0.001953125, %v1027_v49  ;;  %v2893_v49 = vld [vmem:[#allocation9_spill] sm:$0xff] }
 0x215   :  { %v1030_v60 = vadd.f32 1e-05, %v1028_v27 }
 0x217   :  { %1524 = vrsqrt.f32 %v1030_v60  ;;  %v2901_v60 = vld [vmem:[#allocation24_spill] sm:$0xff] }
 0x221   :  { %v1525_v21 = vpop.eup %1524 }
 0x222   :  { %v1032_v3 = vmul.f32 %v1525_v21, %v1029_v63  ;;  %v2895_v63 = vld [vmem:[#allocation7_spill] sm:$0xff]  ;;  %v2896_v21 = vld [vmem:[#allocation10_spill] sm:$0xff] }
 0x224   :  { %v2005_v15 = vmul.f32 %v1032_v3, %v1863_v11  ;;  %v2009_v27 = vrot.slane %v1032_v3, %v2840_v33  ;;  %v2889_v11 = vld [vmem:[#allocation3_spill] sm:$0xff]  ;;  %v2905_v33 = vld [vmem:[#allocation13_spill] sm:$0xff] }
 0x226   :  { %v2015_v39 = vmul.f32 %v2009_v27, %v1675_v42  ;;  %v2019_v38 = vmul.f32 %v2009_v27, %v1683_v46  ;;  %v2023_v23 = vmul.f32 %v2888_v40, %v2009_v27  ;;  %v2027_v37 = vmul.f32 %v2889_v11, %v2009_v27  ;;  %v2897_v40 = vld [vmem:[#allocation16_spill] sm:$0xff] }
 0x227   :  { %v2031_v61 = vmul.f32 %v2009_v27, %v2890_v10  ;;  %v2035_v42 = vmul.f32 %v2009_v27, %v1704_v58  ;;  %v2039_v46 = vmul.f32 %v1690_v50, %v2009_v27  ;;  %v2043_v55 = vmul.f32 %v1700_v56, %v2009_v27  ;;  %v2898_v10 = vld [vmem:[#allocation20_spill] sm:$0xff] }
 0x228   :  { %v2047_v31 = vmul.f32 %v2009_v27, %v1715_v1  ;;  %v2051_v28 = vmul.f32 %v2009_v27, %v1724_v6  ;;  %v2055_v58 = vmul.f32 %v1710_v62, %v2009_v27  ;;  %v2059_v50 = vmul.f32 %v1720_v4, %v2009_v27 }
 0x229   :  { %v2063_v56 = vmul.f32 %v2009_v27, %v1735_v13  ;;  %v2067_v1 = vmul.f32 %v2009_v27, %v1744_v18  ;;  %v2071_v6 = vmul.f32 %v2891_v36, %v2009_v27  ;;  %v2075_v62 = vmul.f32 %v2892_v24, %v2009_v27  ;;  %v2899_v24 = vld [vmem:[#allocation14_spill] sm:$0xff] }
 0x22a   :  { %v2079_v4 = vmul.f32 %v2009_v27, %v2893_v49  ;;  %v2083_v13 = vmul.f32 %v2009_v27, %v2894_v32  ;;  %v2087_v18 = vmul.f32 %v2895_v63, %v2009_v27  ;;  %v2091_v3 = vmul.f32 %v2896_v21, %v2009_v27  ;;  %v2900_v32 = vld [vmem:[#allocation18_spill] sm:$0xff] }
 0x22b   :  { %v2095_v11 = vmul.f32 %v2009_v27, %v2897_v40  ;;  %v2099_v36 = vmul.f32 %v2009_v27, %v2898_v10  ;;  %v2103_v49 = vmul.f32 %v2899_v24, %v2009_v27  ;;  %v2107_v63 = vmul.f32 %v2900_v32, %v2009_v27 }
 0x22c   :  { %v2111_v21 = vmul.f32 %v2009_v27, %v2901_v60  ;;  %v2115_v40 = vmul.f32 %v2009_v27, %v2880_v53  ;;  %v2119_v10 = vmul.f32 %v2881_v22, %v2009_v27  ;;  %v2123_v24 = vmul.f32 %v2882_v9, %v2009_v27 }
 0x22d   :  { %v2127_v32 = vmul.f32 %v2009_v27, %v2883_v20  ;;  %v2131_v60 = vmul.f32 %v2009_v27, %v1824_v51  ;;  %v2135_v53 = vmul.f32 %v1810_v35, %v2009_v27  ;;  %v2139_v22 = vmul.f32 %v1820_v48, %v2009_v27 }
 0x22e   :  { %v2143_v9 = vmul.f32 %v2009_v27, %v1677_v43  ;;  %v2147_v20 = vmul.f32 %v2009_v27, %v1685_v47  ;;  %v2151_v51 = vmul.f32 %v1673_v41, %v2009_v27  ;;  %v2155_v35 = vmul.f32 %v1681_v45, %v2009_v27 }
 0x22f   :  { %v2159_v48 = vmul.f32 %v2009_v27, %v1697_v54  ;;  %v2163_v43 = vmul.f32 %v2009_v27, %v1706_v59  ;;  %v2167_v47 = vmul.f32 %v1693_v52, %v2009_v27  ;;  %v2171_v41 = vmul.f32 %v1702_v57, %v2009_v27 }
 0x230   :  { %v2175_v45 = vmul.f32 %v2009_v27, %v1717_v2  ;;  %v2179_v54 = vmul.f32 %v2009_v27, %v1726_v7  ;;  %v2183_v59 = vmul.f32 %v1713_v0, %v2009_v27  ;;  %v2187_v52 = vmul.f32 %v1722_v5, %v2009_v27 }
 0x231   :  { %v2191_v57 = vmul.f32 %v2009_v27, %v1737_v14  ;;  %v2195_v2 = vmul.f32 %v2009_v27, %v1746_v19  ;;  %v2199_v7 = vmul.f32 %v1733_v12, %v2009_v27  ;;  %v2203_v0 = vmul.f32 %v1742_v17, %v2009_v27 }
 0x232   :  { %v2207_v5 = vmul.f32 %v2009_v27, %v1757_v26  ;;  %v2211_v14 = vmul.f32 %v2009_v27, %v2905_v33  ;;  %v2227_v26 = vmul.f32 %v2009_v27, %v2884_v16  ;;  %v2231_v33 = vmul.f32 %v2885_v25, %v2009_v27 }
 0x233   :  { %2902 = vst [vmem:[#allocation28_spill] sm:$0xff] %v2191_v57  ;;  %2903 = vst [vmem:[#allocation22_spill] sm:$0xff] %v2195_v2  ;;  %v2906_v57 = vld [vmem:[#allocation8_spill] sm:$0xff]  ;;  %v2907_v2 = vld [vmem:[#allocation11_spill] sm:$0xff] }
 0x234   :  { %2904 = vst [vmem:[#allocation26_spill] sm:$0xff] %v2199_v7  ;;  %v2215_v19 = vmul.f32 %v2906_v57, %v2009_v27  ;;  %v2219_v12 = vmul.f32 %v2907_v2, %v2009_v27  ;;  %v2909_v7 = vld [vmem:[#allocation17_spill] sm:$0xff]  ;;  %2911 = vst [vmem:[#allocation15_spill] sm:$0xff] %v2227_v26  ;;  %v2235_v57 = vmul.f32 %v2886_v30, %v2009_v27  ;;  %v2918_v26 = vld [vmem:[#allocation27_spill] sm:$0xff] }
 0x235   :  { %v2223_v17 = vmul.f32 %v2009_v27, %v2909_v7  ;;  %2912 = vst [vmem:[#allocation19_spill] sm:$0xff] %v2231_v33  ;;  %v2239_v2 = vmul.f32 %v2009_v27, %v2887_v44  ;;  %v2251_v25 = vmul.f32 %v2918_v26, %v2009_v27  ;;  %v2920_v33 = vld [vmem:[#allocation32_spill] sm:$0xff]  ;;  %v2924_v26 = vsub.f32 %v2002_v8, %v2005_v15 }
 0x236   :  { %2908 = vst [vmem:[#allocation31_spill] sm:$0xff] %v2219_v12  ;;  %2913 = vst [vmem:[#allocation25_spill] sm:$0xff] %v2235_v57  ;;  %v2915_v12 = vld [vmem:[#allocation29_spill] sm:$0xff]  ;;  %v2255_v30 = vmul.f32 %v2009_v27, %v2920_v33 }
 0x237   :  { %2910 = vst [vmem:[#allocation21_spill] sm:$0xff] %v2223_v17  ;;  %2914 = vst [vmem:[#allocation2_spill] sm:$0xff] %v2239_v2  ;;  %v2243_v7 = vmul.f32 %v2009_v27, %v2915_v12  ;;  %v2916_v17 = vld [vmem:[#allocation23_spill] sm:$0xff]  ;;  %v2921_v57 = vld [vmem:[#allocation33_spill] sm:$0xff] }
 0x238   :  { %v2247_v16 = vmul.f32 %v2916_v17, %v2009_v27  ;;  %2919 = vst [vmem:[#allocation4_spill] sm:$0xff] %v2251_v25  ;;  %v2259_v44 = vmul.f32 %v2009_v27, %v2921_v57  ;;  %v2922_v2 = vld [vmem:[#allocation30_spill] sm:$0xff]  ;;  %v2267_v17 = vmul.f32 %v1822_v34, %v2009_v27 }
 0x239   :  { %v2263_v12 = vmul.f32 %v2922_v2, %v2009_v27 }
 0x23a   :  { %2917 = vst [vmem:[#allocation3_spill] sm:$0xff] %v2247_v16  ;;  %v2923_v16 = vsub.s32 0, %v1993_v29 }
 0x23c   :  { %v2274_v25 = vrot.slane %v2924_v26, %v2923_v16 }
 0x23e   :  { %v2278_v33 = vadd.f32 %v2274_v25, %v2015_v39  ;;  %v2282_v57 = vadd.f32 %v2274_v25, %v2019_v38  ;;  %v2286_v2 = vadd.f32 %v2274_v25, %v2023_v23  ;;  %v2290_v34 = vadd.f32 %v2274_v25, %v2027_v37 }
 0x23f   :  { %v2294_v29 = vadd.f32 %v2274_v25, %v2031_v61  ;;  %v2298_v8 = vadd.f32 %v2274_v25, %v2035_v42  ;;  %v2302_v15 = vadd.f32 %v2274_v25, %v2039_v46  ;;  %v2306_v27 = vadd.f32 %v2274_v25, %v2043_v55 }
 0x240   :  { %v2310_v39 = vadd.f32 %v2274_v25, %v2047_v31  ;;  %v2314_v38 = vadd.f32 %v2274_v25, %v2051_v28  ;;  %v2318_v23 = vadd.f32 %v2274_v25, %v2055_v58  ;;  %v2322_v37 = vadd.f32 %v2274_v25, %v2059_v50 }
 0x241   :  { %v2326_v61 = vadd.f32 %v2274_v25, %v2063_v56  ;;  %v2330_v42 = vadd.f32 %v2274_v25, %v2067_v1  ;;  %v2334_v46 = vadd.f32 %v2274_v25, %v2071_v6  ;;  %v2338_v55 = vadd.f32 %v2274_v25, %v2075_v62 }
 0x242   :  { %v2342_v31 = vadd.f32 %v2274_v25, %v2079_v4  ;;  %v2346_v28 = vadd.f32 %v2274_v25, %v2083_v13  ;;  %v2350_v58 = vadd.f32 %v2274_v25, %v2087_v18  ;;  %v2354_v50 = vadd.f32 %v2274_v25, %v2091_v3 }
 0x243   :  { %v2358_v56 = vadd.f32 %v2274_v25, %v2095_v11  ;;  %v2362_v1 = vadd.f32 %v2274_v25, %v2099_v36  ;;  %v2366_v6 = vadd.f32 %v2274_v25, %v2103_v49  ;;  %v2370_v62 = vadd.f32 %v2274_v25, %v2107_v63 }
 0x244   :  { %v2374_v4 = vadd.f32 %v2274_v25, %v2111_v21  ;;  %v2378_v13 = vadd.f32 %v2274_v25, %v2115_v40  ;;  %v2382_v18 = vadd.f32 %v2274_v25, %v2119_v10  ;;  %v2386_v3 = vadd.f32 %v2274_v25, %v2123_v24 }
 0x245   :  { %v2390_v11 = vadd.f32 %v2274_v25, %v2127_v32  ;;  %v2394_v36 = vadd.f32 %v2274_v25, %v2131_v60  ;;  %v2398_v49 = vadd.f32 %v2274_v25, %v2135_v53  ;;  %v2402_v63 = vadd.f32 %v2274_v25, %v2139_v22 }
 0x246   :  { %v2406_v21 = vadd.f32 %v2274_v25, %v2143_v9  ;;  %v2410_v40 = vadd.f32 %v2274_v25, %v2147_v20  ;;  %v2414_v10 = vadd.f32 %v2274_v25, %v2151_v51  ;;  %v2418_v24 = vadd.f32 %v2274_v25, %v2155_v35 }
 0x247   :  { %v2422_v32 = vadd.f32 %v2274_v25, %v2159_v48  ;;  %v2426_v60 = vadd.f32 %v2274_v25, %v2163_v43  ;;  %v2430_v53 = vadd.f32 %v2274_v25, %v2167_v47  ;;  %v2434_v22 = vadd.f32 %v2274_v25, %v2171_v41  ;;  %v2925_v48 = vld [vmem:[#allocation28_spill] sm:$0xff]  ;;  %v2926_v47 = vld [vmem:[#allocation22_spill] sm:$0xff] }
 0x248   :  { %v2438_v9 = vadd.f32 %v2274_v25, %v2175_v45  ;;  %v2442_v20 = vadd.f32 %v2274_v25, %v2179_v54  ;;  %v2446_v51 = vadd.f32 %v2274_v25, %v2183_v59  ;;  %v2450_v35 = vadd.f32 %v2274_v25, %v2187_v52  ;;  %v2927_v45 = vld [vmem:[#allocation26_spill] sm:$0xff] }
 0x249   :  { %v2454_v43 = vadd.f32 %v2274_v25, %v2925_v48  ;;  %v2458_v41 = vadd.f32 %v2274_v25, %v2926_v47  ;;  %v2462_v54 = vadd.f32 %v2274_v25, %v2927_v45  ;;  %v2466_v59 = vadd.f32 %v2274_v25, %v2203_v0  ;;  %v2932_v48 = vld [vmem:[#allocation31_spill] sm:$0xff]  ;;  %v2933_v45 = vld [vmem:[#allocation21_spill] sm:$0xff] }
 0x24a   :  { %v2470_v52 = vadd.f32 %v2274_v25, %v2207_v5  ;;  %v2474_v16 = vadd.f32 %v2274_v25, %v2211_v14  ;;  %v2478_v26 = vadd.f32 %v2274_v25, %v2215_v19  ;;  %v2482_v47 = vadd.f32 %v2274_v25, %v2932_v48 }
 0x24b   :  { %2928 = vst [vmem:[#allocation5_spill] sm:$0xff] %v2466_v59  ;;  %v2486_v0 = vadd.f32 %v2274_v25, %v2933_v45  ;;  %v2935_v59 = vld [vmem:[#allocation15_spill] sm:$0xff]  ;;  %v2506_v45 = vadd.f32 %v2274_v25, %v2243_v7  ;;  %v2526_v7 = vadd.f32 %v2274_v25, %v2263_v12  ;;  %v1183_v12 = vmax.f32 %v2306_v27, 0.0 }
 0x24c   :  { %2929 = vst [vmem:[#allocation6_spill] sm:$0xff] %v2470_v52  ;;  %2930 = vst [vmem:[#allocation9_spill] sm:$0xff] %v2474_v16  ;;  %v2490_v5 = vadd.f32 %v2274_v25, %v2935_v59  ;;  %v2937_v52 = vld [vmem:[#allocation19_spill] sm:$0xff]  ;;  %v2938_v16 = vld [vmem:[#allocation25_spill] sm:$0xff]  ;;  %v1194_v27 = vmax.f32 %v2350_v58, 0.0  ;;  %v1205_v58 = vmax.f32 %v2394_v36, 0.0 }
 0x24d   :  { %2931 = vst [vmem:[#allocation12_spill] sm:$0xff] %v2478_v26  ;;  %2934 = vst [vmem:[#allocation7_spill] sm:$0xff] %v2486_v0  ;;  %v2494_v14 = vadd.f32 %v2274_v25, %v2937_v52  ;;  %v2498_v19 = vadd.f32 %v2274_v25, %v2938_v16  ;;  %v2939_v26 = vld [vmem:[#allocation2_spill] sm:$0xff]  ;;  %v2940_v0 = vld [vmem:[#allocation3_spill] sm:$0xff]  ;;  %v2518_v16 = vadd.f32 %v2274_v25, %v2255_v30  ;;  %v1179_v30 = vmax.f32 %v2290_v34, 0.0 }
 0x24e   :  { %2936 = vst [vmem:[#allocation10_spill] sm:$0xff] %v2490_v5  ;;  %v2502_v48 = vadd.f32 %v2274_v25, %v2939_v26  ;;  %v2510_v59 = vadd.f32 %v2274_v25, %v2940_v0  ;;  %v2942_v5 = vld [vmem:[#allocation4_spill] sm:$0xff]  ;;  %v2522_v26 = vadd.f32 %v2274_v25, %v2259_v44  ;;  %2946 = vst [vmem:[#allocation24_spill] sm:$0xff] %v2526_v7  ;;  %v1181_v44 = vmax.f32 %v2298_v8, 0.0 }
 0x24f   :  { %v2514_v52 = vadd.f32 %v2274_v25, %v2942_v5  ;;  %2944 = vst [vmem:[#allocation14_spill] sm:$0xff] %v2518_v16  ;;  %v2530_v0 = vadd.f32 %v2274_v25, %v2267_v17  ;;  %v1177_v5 = vmax.f32 %v2282_v57, 0.0  ;;  %v1180_v16 = vmax.f32 %v2294_v29, 0.0  ;;  %1243 = vst [vmem:[%s2792_s4 + $0x18] sm:$0xff] %v1179_v30 }
 0x250   :  { %2941 = vst [vmem:[#allocation16_spill] sm:$0xff] %v2510_v59  ;;  %2945 = vst [vmem:[#allocation18_spill] sm:$0xff] %v2522_v26  ;;  %v1176_v59 = vmax.f32 %v2278_v33, 0.0  ;;  %v1182_v26 = vmax.f32 %v2302_v15, 0.0  ;;  %v1184_v7 = vmax.f32 %v2310_v39, 0.0  ;;  %v1185_v25 = vmax.f32 %v2314_v38, 0.0 }
 0x251   :  { %2943 = vst [vmem:[#allocation20_spill] sm:$0xff] %v2514_v52  ;;  %v1178_v52 = vmax.f32 %v2286_v2, 0.0  ;;  %v1186_v17 = vmax.f32 %v2318_v23, 0.0  ;;  %v1187_v33 = vmax.f32 %v2322_v37, 0.0  ;;  %1241 = vst [vmem:[%s2792_s4 + $0x8] sm:$0xff] %v1177_v5  ;;  %v1188_v57 = vmax.f32 %v2326_v61, 0.0 }
 0x252   :  { %1240 = vst [vmem:[%s2792_s4] sm:$0xff] %v1176_v59  ;;  %v1189_v2 = vmax.f32 %v2330_v42, 0.0  ;;  %v1190_v34 = vmax.f32 %v2334_v46, 0.0  ;;  %v1191_v29 = vmax.f32 %v2338_v55, 0.0  ;;  %1244 = vst [vmem:[%s2792_s4 + $0x20] sm:$0xff] %v1180_v16  ;;  %v1192_v8 = vmax.f32 %v2342_v31, 0.0 }
 0x253   :  { %1242 = vst [vmem:[%s2792_s4 + $0x10] sm:$0xff] %v1178_v52  ;;  %1245 = vst [vmem:[%s2792_s4 + $0x28] sm:$0xff] %v1181_v44  ;;  %v1193_v15 = vmax.f32 %v2346_v28, 0.0  ;;  %v1195_v39 = vmax.f32 %v2354_v50, 0.0  ;;  %v1196_v38 = vmax.f32 %v2358_v56, 0.0  ;;  %v1197_v23 = vmax.f32 %v2362_v1, 0.0 }
 0x254   :  { %1246 = vst [vmem:[%s2792_s4 + $0x30] sm:$0xff] %v1182_v26  ;;  %1247 = vst [vmem:[%s2792_s4 + $0x38] sm:$0xff] %v1183_v12  ;;  %v1198_v37 = vmax.f32 %v2366_v6, 0.0  ;;  %v1199_v61 = vmax.f32 %v2370_v62, 0.0  ;;  %v1200_v42 = vmax.f32 %v2374_v4, 0.0  ;;  %v1201_v46 = vmax.f32 %v2378_v13, 0.0 }
 0x255   :  { %1248 = vst [vmem:[%s2792_s4 + $0x40] sm:$0xff] %v1184_v7  ;;  %1249 = vst [vmem:[%s2792_s4 + $0x48] sm:$0xff] %v1185_v25  ;;  %v1202_v55 = vmax.f32 %v2382_v18, 0.0  ;;  %v1203_v31 = vmax.f32 %v2386_v3, 0.0  ;;  %v1204_v28 = vmax.f32 %v2390_v11, 0.0  ;;  %v1206_v50 = vmax.f32 %v2398_v49, 0.0 }
 0x256   :  { %1250 = vst [vmem:[%s2792_s4 + $0x50] sm:$0xff] %v1186_v17  ;;  %1251 = vst [vmem:[%s2792_s4 + $0x58] sm:$0xff] %v1187_v33  ;;  %v1207_v56 = vmax.f32 %v2402_v63, 0.0  ;;  %v1208_v1 = vmax.f32 %v2406_v21, 0.0  ;;  %v1209_v6 = vmax.f32 %v2410_v40, 0.0  ;;  %v1210_v62 = vmax.f32 %v2414_v10, 0.0 }
 0x257   :  { %1252 = vst [vmem:[%s2792_s4 + $0x60] sm:$0xff] %v1188_v57  ;;  %1253 = vst [vmem:[%s2792_s4 + $0x68] sm:$0xff] %v1189_v2  ;;  %v1211_v4 = vmax.f32 %v2418_v24, 0.0  ;;  %v1212_v13 = vmax.f32 %v2422_v32, 0.0  ;;  %v1213_v18 = vmax.f32 %v2426_v60, 0.0  ;;  %v1214_v3 = vmax.f32 %v2430_v53, 0.0 }
 0x258   :  { %1254 = vst [vmem:[%s2792_s4 + $0x70] sm:$0xff] %v1190_v34  ;;  %1255 = vst [vmem:[%s2792_s4 + $0x78] sm:$0xff] %v1191_v29  ;;  %v1215_v11 = vmax.f32 %v2434_v22, 0.0  ;;  %v1216_v36 = vmax.f32 %v2438_v9, 0.0  ;;  %v1217_v49 = vmax.f32 %v2442_v20, 0.0  ;;  %v1218_v63 = vmax.f32 %v2446_v51, 0.0 }
 0x259   :  { %1256 = vst [vmem:[%s2792_s4 + $0x80] sm:$0xff] %v1192_v8  ;;  %1257 = vst [vmem:[%s2792_s4 + $0x88] sm:$0xff] %v1193_v15  ;;  %v1219_v21 = vmax.f32 %v2450_v35, 0.0  ;;  %v1220_v40 = vmax.f32 %v2454_v43, 0.0  ;;  %v1221_v10 = vmax.f32 %v2458_v41, 0.0  ;;  %v1222_v24 = vmax.f32 %v2462_v54, 0.0 }
 0x25a   :  { %1258 = vst [vmem:[%s2792_s4 + $0x90] sm:$0xff] %v1194_v27  ;;  %1259 = vst [vmem:[%s2792_s4 + $0x98] sm:$0xff] %v1195_v39  ;;  %v2947_v32 = vld [vmem:[#allocation5_spill] sm:$0xff]  ;;  %v2948_v53 = vld [vmem:[#allocation6_spill] sm:$0xff]  ;;  %v1227_v43 = vmax.f32 %v2482_v47, 0.0  ;;  %v1230_v52 = vmax.f32 %v2494_v14, 0.0 }
 0x25b   :  { %1260 = vst [vmem:[%s2792_s4 + $0xa0] sm:$0xff] %v1196_v38  ;;  %1261 = vst [vmem:[%s2792_s4 + $0xa8] sm:$0xff] %v1197_v23  ;;  %v1223_v60 = vmax.f32 %v2947_v32, 0.0  ;;  %v1224_v22 = vmax.f32 %v2948_v53, 0.0  ;;  %v2949_v9 = vld [vmem:[#allocation9_spill] sm:$0xff]  ;;  %v2950_v51 = vld [vmem:[#allocation12_spill] sm:$0xff] }
 0x25c   :  { %1262 = vst [vmem:[%s2792_s4 + $0xb0] sm:$0xff] %v1198_v37  ;;  %1263 = vst [vmem:[%s2792_s4 + $0xb8] sm:$0xff] %v1199_v61  ;;  %v1225_v20 = vmax.f32 %v2949_v9, 0.0  ;;  %v1226_v35 = vmax.f32 %v2950_v51, 0.0  ;;  %v2951_v41 = vld [vmem:[#allocation7_spill] sm:$0xff]  ;;  %v2952_v59 = vld [vmem:[#allocation10_spill] sm:$0xff] }
 0x25d   :  { %1264 = vst [vmem:[%s2792_s4 + $0xc0] sm:$0xff] %v1200_v42  ;;  %1265 = vst [vmem:[%s2792_s4 + $0xc8] sm:$0xff] %v1201_v46  ;;  %v1228_v54 = vmax.f32 %v2951_v41, 0.0  ;;  %v1229_v47 = vmax.f32 %v2952_v59, 0.0  ;;  %v1231_v16 = vmax.f32 %v2498_v19, 0.0  ;;  %v1232_v14 = vmax.f32 %v2502_v48, 0.0 }
 0x25e   :  { %1266 = vst [vmem:[%s2792_s4 + $0xd0] sm:$0xff] %v1202_v55  ;;  %1267 = vst [vmem:[%s2792_s4 + $0xd8] sm:$0xff] %v1203_v31  ;;  %v1233_v19 = vmax.f32 %v2506_v45, 0.0  ;;  %v2953_v26 = vld [vmem:[#allocation16_spill] sm:$0xff]  ;;  %v2955_v48 = vld [vmem:[#allocation14_spill] sm:$0xff]  ;;  %v1239_v33 = vmax.f32 %v2530_v0, 0.0 }
 0x25f   :  { %1268 = vst [vmem:[%s2792_s4 + $0xe0] sm:$0xff] %v1204_v28  ;;  %1269 = vst [vmem:[%s2792_s4 + $0xe8] sm:$0xff] %v1205_v58  ;;  %v1234_v7 = vmax.f32 %v2953_v26, 0.0  ;;  %v2954_v5 = vld [vmem:[#allocation20_spill] sm:$0xff]  ;;  %v1236_v45 = vmax.f32 %v2955_v48, 0.0  ;;  %v2956_v44 = vld [vmem:[#allocation18_spill] sm:$0xff] }
 0x260   :  { %1270 = vst [vmem:[%s2792_s4 + $0xf0] sm:$0xff] %v1206_v50  ;;  %1271 = vst [vmem:[%s2792_s4 + $0xf8] sm:$0xff] %v1207_v56  ;;  %v1235_v30 = vmax.f32 %v2954_v5, 0.0  ;;  %v1237_v12 = vmax.f32 %v2956_v44, 0.0  ;;  %v2957_v25 = vld [vmem:[#allocation24_spill] sm:$0xff] }
 0x261   :  { %1272 = vst [vmem:[%s2792_s4 + $0x100] sm:$0xff] %v1208_v1  ;;  %1273 = vst [vmem:[%s2792_s4 + $0x108] sm:$0xff] %v1209_v6  ;;  %v1238_v17 = vmax.f32 %v2957_v25, 0.0 }
 0x262   :  { %1274 = vst [vmem:[%s2792_s4 + $0x110] sm:$0xff] %v1210_v62  ;;  %1275 = vst [vmem:[%s2792_s4 + $0x118] sm:$0xff] %v1211_v4 }
 0x263   :  { %1276 = vst [vmem:[%s2792_s4 + $0x120] sm:$0xff] %v1212_v13  ;;  %1277 = vst [vmem:[%s2792_s4 + $0x128] sm:$0xff] %v1213_v18 }
 0x264   :  { %1278 = vst [vmem:[%s2792_s4 + $0x130] sm:$0xff] %v1214_v3  ;;  %1279 = vst [vmem:[%s2792_s4 + $0x138] sm:$0xff] %v1215_v11 }
 0x265   :  { %1280 = vst [vmem:[%s2792_s4 + $0x140] sm:$0xff] %v1216_v36  ;;  %1281 = vst [vmem:[%s2792_s4 + $0x148] sm:$0xff] %v1217_v49 }
 0x266   :  { %1282 = vst [vmem:[%s2792_s4 + $0x150] sm:$0xff] %v1218_v63  ;;  %1283 = vst [vmem:[%s2792_s4 + $0x158] sm:$0xff] %v1219_v21 }
 0x267   :  { %1284 = vst [vmem:[%s2792_s4 + $0x160] sm:$0xff] %v1220_v40  ;;  %1285 = vst [vmem:[%s2792_s4 + $0x168] sm:$0xff] %v1221_v10 }
 0x268   :  { %1286 = vst [vmem:[%s2792_s4 + $0x170] sm:$0xff] %v1222_v24  ;;  %1287 = vst [vmem:[%s2792_s4 + $0x178] sm:$0xff] %v1223_v60 }
 0x269   :  { %1288 = vst [vmem:[%s2792_s4 + $0x180] sm:$0xff] %v1224_v22  ;;  %1289 = vst [vmem:[%s2792_s4 + $0x188] sm:$0xff] %v1225_v20 }
 0x26a   :  { %1290 = vst [vmem:[%s2792_s4 + $0x190] sm:$0xff] %v1226_v35  ;;  %1291 = vst [vmem:[%s2792_s4 + $0x198] sm:$0xff] %v1227_v43 }
 0x26b   :  { %1292 = vst [vmem:[%s2792_s4 + $0x1a0] sm:$0xff] %v1228_v54  ;;  %1293 = vst [vmem:[%s2792_s4 + $0x1a8] sm:$0xff] %v1229_v47 }
 0x26c   :  { %1294 = vst [vmem:[%s2792_s4 + $0x1b0] sm:$0xff] %v1230_v52  ;;  %1295 = vst [vmem:[%s2792_s4 + $0x1b8] sm:$0xff] %v1231_v16 }
 0x26d   :  { %1296 = vst [vmem:[%s2792_s4 + $0x1c0] sm:$0xff] %v1232_v14  ;;  %1297 = vst [vmem:[%s2792_s4 + $0x1c8] sm:$0xff] %v1233_v19 }
 0x26e   :  { %1298 = vst [vmem:[%s2792_s4 + $0x1d0] sm:$0xff] %v1234_v7  ;;  %1299 = vst [vmem:[%s2792_s4 + $0x1d8] sm:$0xff] %v1235_v30 }
 0x26f   :  { %1300 = vst [vmem:[%s2792_s4 + $0x1e0] sm:$0xff] %v1236_v45  ;;  %1301 = vst [vmem:[%s2792_s4 + $0x1e8] sm:$0xff] %v1237_v12 }
 0x270   :  { %1302 = vst [vmem:[%s2792_s4 + $0x1f0] sm:$0xff] %v1238_v17  ;;  %1303 = vst [vmem:[%s2792_s4 + $0x1f8] sm:$0xff] %v1239_v33 }

</bundles_post_ra>
